<compile_context>
chip_gen: v6e
topology: v6e:2x2x1
jax: 0.10.0
libtpu: 0.0.40
codegen_flags: <defaults>
</compile_context>

<pallas_src>
import functools

import jax
import jax.numpy as jnp
import numpy as np
from jax import lax
from jax.experimental import pallas as pl
from jax.experimental.pallas import tpu as pltpu


# ----------------------------------------------------------------------------
# Kernel builder: one (batch_block, time_chunk) grid cell.
# ----------------------------------------------------------------------------
def _make_lstm_kernel(T, TC, Bblk, H, L):
    NT = T // TC
    lane_aligned = (H % 128 == 0)

    def kernel(len_ref, x_ref, *refs):
        # refs = [W_ih_l, W_hh_l, b_l]*L, W_lin, b_lin, y_ref, 6 scratch refs
        wlin_ref = refs[3 * L]
        blin_ref = refs[3 * L + 1]
        y_ref = refs[3 * L + 2]
        (xtm_scr, act_scr, gates_scr, h_scr, c_scr, last_scr) = refs[3 * L + 3:]

        t_chunk = pl.program_id(1)

        # New batch block (time chunk 0) -> reset carried state.
        @pl.when(t_chunk == 0)
        def _init():
            h_scr[...] = jnp.zeros_like(h_scr)
            c_scr[...] = jnp.zeros_like(c_scr)
            last_scr[...] = jnp.zeros_like(last_scr)

        lengths = len_ref[...]            # (Bblk, 1) int32
        t_base = t_chunk * TC             # global timestep of local step 0

        # Re-lay out the batch-major (Bblk, TC, D) x block to time-major
        # (TC*Bblk, D) with static in-VMEM copies (no HBM transpose op).
        for tl in range(TC):
            xtm_scr[tl * Bblk:(tl + 1) * Bblk, :] = x_ref[:, tl, :]

        for l in range(L):
            wih = refs[3 * l][...]        # (D_l, 4H)
            whh = refs[3 * l + 1][...]    # (H, 4H)
            bias = refs[3 * l + 2][...]   # (1, 4H)
            last_layer = (l == L - 1)

            # Hoisted input projection for the whole chunk (one MXU call),
            # materialised into VMEM scratch so the time loop reads it with
            # pl.ds (flat vreg pressure).
            # NOTE: act_scr (layer l-1 outputs) is fully consumed by this dot
            # BEFORE the time loop overwrites it with layer l outputs; do not
            # move this load inside the loop.
            inp = xtm_scr[...] if l == 0 else act_scr[...]
            gates_scr[...] = (
                jnp.dot(inp, wih, preferred_element_type=jnp.float32) + bias)

            def step(tl, carry, whh=whh, last_layer=last_layer):
                row = pl.multiple_of(tl * Bblk, Bblk)
                if last_layer:
                    h, c, last = carry
                else:
                    h, c = carry
                g = gates_scr[pl.ds(row, Bblk), :] + jnp.dot(
                    h, whh, preferred_element_type=jnp.float32)   # (Bblk, 4H)
                if lane_aligned:
                    # Per-gate activations on lane-aligned slices.
                    i_g = jax.nn.sigmoid(g[:, 0 * H:1 * H])
                    f_g = jax.nn.sigmoid(g[:, 1 * H:2 * H])
                    g_g = jnp.tanh(g[:, 2 * H:3 * H])
                    o_g = jax.nn.sigmoid(g[:, 3 * H:4 * H])
                else:
                    # 4H fits a vreg: full-tile activations, then slice.
                    sig = jax.nn.sigmoid(g)
                    tnh = jnp.tanh(g)
                    i_g = sig[:, 0 * H:1 * H]
                    f_g = sig[:, 1 * H:2 * H]
                    g_g = tnh[:, 2 * H:3 * H]
                    o_g = sig[:, 3 * H:4 * H]
                c = f_g * c + i_g * g_g
                h = o_g * jnp.tanh(c)
                if last_layer:
                    # Padding-aware last_by_index: keep h where t == length-1.
                    last = jnp.where(lengths == (t_base + tl + 1), h, last)
                    return h, c, last
                act_scr[pl.ds(row, Bblk), :] = h
                return h, c

            if last_layer:
                init = (h_scr[l], c_scr[l], last_scr[...])
            else:
                init = (h_scr[l], c_scr[l])
            out = lax.fori_loop(0, TC, step, init, unroll=True)
            h_scr[l] = out[0]
            c_scr[l] = out[1]
            if last_layer:
                last_scr[...] = out[2]

        # Linear head, only on the final time chunk (output block stays
        # resident across the "arbitrary" time axis).
        @pl.when(t_chunk == NT - 1)
        def _finalize():
            y = jnp.dot(last_scr[...], wlin_ref[...],
                        preferred_element_type=jnp.float32) + blin_ref[...]
            y_ref[...] = y.astype(y_ref.dtype)

    return kernel


# ----------------------------------------------------------------------------
# BasicLSTM forward (unidirectional, dropout=0): one gridded pallas_call.
# ----------------------------------------------------------------------------
@functools.partial(jax.jit, static_argnames=("block_b", "chunk_t"))
def basic_lstm_forward(x_btd, lengths, lstm_params, w_lin_t, b_lin,
                       *, block_b=None, chunk_t=None):
    """x_btd: (B, T, D) batch_first; lengths int in [1, T];
    lstm_params: [(W_ih^T (D_l,4H), W_hh^T (H,4H), b_ih+b_hh (1,4H))] per layer;
    w_lin_t: (H, O); b_lin: (1, O)."""
    B, T, D = x_btd.shape
    L = len(lstm_params)
    H = lstm_params[0][1].shape[0]
    O = w_lin_t.shape[1]

    Bblk = B if block_b is None else block_b
    TC = T if chunk_t is None else chunk_t
    assert B % Bblk == 0 and T % TC == 0
    assert (Bblk % 8 == 0) or (Bblk == B)   # (8,128) rule for block sublanes
    assert (TC % 8 == 0) or (TC == T)

    # Lane-dense output: pad the Linear head to a 128-multiple width so the
    # final store is an unmasked vst; slice back below.
    ON = ((O + 127) // 128) * 128
    w_lin_pad = jnp.zeros((H, ON), w_lin_t.dtype).at[:, :O].set(w_lin_t)
    b_lin_pad = jnp.zeros((1, ON), b_lin.dtype).at[:, :O].set(b_lin)

    lengths_col = lengths.reshape(B, 1).astype(jnp.int32)

    flat_w = []
    weight_specs = []
    for (wih_t, whh_t, bias) in lstm_params:
        flat_w += [wih_t, whh_t, bias]
        weight_specs += [
            pl.BlockSpec(wih_t.shape, lambda b, t: (0, 0)),   # stays resident
            pl.BlockSpec(whh_t.shape, lambda b, t: (0, 0)),
            pl.BlockSpec(bias.shape, lambda b, t: (0, 0)),
        ]

    grid = (B // Bblk, T // TC)
    in_specs = (
        [pl.BlockSpec((Bblk, 1), lambda b, t: (b, 0)),          # lengths
         pl.BlockSpec((Bblk, TC, D), lambda b, t: (b, t, 0))]   # x chunk
        + weight_specs
        + [pl.BlockSpec((H, ON), lambda b, t: (0, 0)),          # W_lin (padded)
           pl.BlockSpec((1, ON), lambda b, t: (0, 0))])         # b_lin (padded)
    out_specs = pl.BlockSpec((Bblk, ON), lambda b, t: (b, 0))

    scratch_shapes = [
        pltpu.VMEM((TC * Bblk, D), jnp.float32),       # time-major x chunk
        pltpu.VMEM((TC * Bblk, H), jnp.float32),       # inter-layer activations
        pltpu.VMEM((TC * Bblk, 4 * H), jnp.float32),   # hoisted gates (x @ W_ih)
        pltpu.VMEM((L, Bblk, H), jnp.float32),         # carried h per layer
        pltpu.VMEM((L, Bblk, H), jnp.float32),         # carried c per layer
        pltpu.VMEM((Bblk, H), jnp.float32),            # carried last-valid h
    ]

    kernel = _make_lstm_kernel(T, TC, Bblk, H, L)
    y_pad = pl.pallas_call(
        kernel,
        out_shape=jax.ShapeDtypeStruct((B, ON), jnp.float32),
        grid=grid,
        in_specs=in_specs,
        out_specs=out_specs,
        scratch_shapes=scratch_shapes,
        compiler_params=pltpu.CompilerParams(
            dimension_semantics=("parallel", "arbitrary"),
            vmem_limit_bytes=48 * 1024 * 1024),
    )(lengths_col, x_btd, *flat_w, w_lin_pad, b_lin_pad)
    return y_pad[:, :O]


# ----------------------------------------------------------------------------
# Pure-JAX reference (mirrors torch.nn.LSTM semantics) for verification.
# ----------------------------------------------------------------------------
def reference_forward(x_btd, lengths, lstm_params, w_lin_t, b_lin):
    B = x_btd.shape[0]
    seq = jnp.transpose(x_btd, (1, 0, 2))  # (T, B, D)
    for (w_ih_t, w_hh_t, b) in lstm_params:
        H = w_hh_t.shape[0]

        def step(carry, xt, w_ih_t=w_ih_t, w_hh_t=w_hh_t, b=b, H=H):
            hh, cc = carry
            gates = xt @ w_ih_t + hh @ w_hh_t + b[0]
            i = jax.nn.sigmoid(gates[:, 0 * H:1 * H])
            f = jax.nn.sigmoid(gates[:, 1 * H:2 * H])
            g = jnp.tanh(gates[:, 2 * H:3 * H])
            o = jax.nn.sigmoid(gates[:, 3 * H:4 * H])
            cc = f * cc + i * g
            hh = o * jnp.tanh(cc)
            return (hh, cc), hh

        init = (jnp.zeros((B, H), jnp.float32), jnp.zeros((B, H), jnp.float32))
        _, seq = jax.lax.scan(step, init, seq)
    last = seq[lengths - 1, jnp.arange(B), :]  # last_by_index
    return last @ w_lin_t + b_lin[0]


if __name__ == "__main__":
    # Module config: input_dim=16, rnn_size=32, output_dim=4, num_layers=2,
    # bidirectional=False, dropout=0 (inference no-op).
    B, T, D, H, O, L = 16, 16, 16, 32, 4, 2

    key = jax.random.PRNGKey(0)
    k_x, k_len, k_p = jax.random.split(key, 3)

    x = jax.random.normal(k_x, (B, T, D), dtype=jnp.float32)
    lengths = jax.random.randint(k_len, (B,), 1, T + 1).astype(jnp.int32)

    # PyTorch-style uniform(-1/sqrt(H), 1/sqrt(H)) init.
    bound = 1.0 / np.sqrt(H)
    lstm_params = []
    pkeys = jax.random.split(k_p, 4 * L + 2)
    for layer in range(L):
        d_in = D if layer == 0 else H
        w_ih = jax.random.uniform(pkeys[4 * layer + 0], (4 * H, d_in), jnp.float32, -bound, bound)
        w_hh = jax.random.uniform(pkeys[4 * layer + 1], (4 * H, H), jnp.float32, -bound, bound)
        b_ih = jax.random.uniform(pkeys[4 * layer + 2], (4 * H,), jnp.float32, -bound, bound)
        b_hh = jax.random.uniform(pkeys[4 * layer + 3], (4 * H,), jnp.float32, -bound, bound)
        lstm_params.append((w_ih.T, w_hh.T, (b_ih + b_hh)[None, :]))
    w_lin = jax.random.uniform(pkeys[-2], (O, H), jnp.float32, -bound, bound)
    b_lin = jax.random.uniform(pkeys[-1], (O,), jnp.float32, -bound, bound)
    w_lin_t = w_lin.T
    b_lin_2d = b_lin[None, :]

    # grid = (B//8, T//8) = (2, 2): exercises both the "parallel" batch axis
    # and the carried-state "arbitrary" time-chunk axis.
    y = basic_lstm_forward(x, lengths, lstm_params, w_lin_t, b_lin_2d,
                           block_b=8, chunk_t=8)
    y = jax.block_until_ready(y)

    y_ref = reference_forward(x, lengths, lstm_params, w_lin_t, b_lin_2d)
    np.testing.assert_allclose(np.asarray(y), np.asarray(y_ref), rtol=1e-5, atol=1e-5)

    print("KERNEL_OK")
</pallas_src>

<mosaic_0001>
module attributes {stable_mosaic.version = 11 : i64} {
  func.func @kernel(%arg0: i32, %arg1: i32, %arg2: memref<8x1xi32, #tpu.memory_space<vmem>>, %arg3: memref<8x8x16xf32, #tpu.memory_space<vmem>>, %arg4: memref<16x128xf32, #tpu.memory_space<vmem>>, %arg5: memref<32x128xf32, #tpu.memory_space<vmem>>, %arg6: memref<1x128xf32, #tpu.memory_space<vmem>>, %arg7: memref<32x128xf32, #tpu.memory_space<vmem>>, %arg8: memref<32x128xf32, #tpu.memory_space<vmem>>, %arg9: memref<1x128xf32, #tpu.memory_space<vmem>>, %arg10: memref<32x128xf32, #tpu.memory_space<vmem>>, %arg11: memref<1x128xf32, #tpu.memory_space<vmem>>, %arg12: memref<8x128xf32, #tpu.memory_space<vmem>>, %arg13: memref<64x16xf32, #tpu.memory_space<vmem>>, %arg14: memref<64x32xf32, #tpu.memory_space<vmem>>, %arg15: memref<64x128xf32, #tpu.memory_space<vmem>>, %arg16: memref<2x8x32xf32, #tpu.memory_space<vmem>>, %arg17: memref<2x8x32xf32, #tpu.memory_space<vmem>>, %arg18: memref<8x32xf32, #tpu.memory_space<vmem>>) attributes {dimension_semantics = [#tpu.dimension_semantics<parallel>, #tpu.dimension_semantics<arbitrary>], iteration_bounds = array<i64: 2, 2>, scalar_prefetch = 0 : i64, scratch_operands = 6 : i64, tpu.core_type = #tpu.core_type<tc>, window_params = [{transform_indices = @transform_0, window_bounds = array<i64: 8, 1>}, {transform_indices = @transform_1, window_bounds = array<i64: 8, 8, 16>}, {pipeline_mode = #tpu.pipeline_mode<synchronous>, transform_indices = @transform_2, window_bounds = array<i64: 16, 128>}, {pipeline_mode = #tpu.pipeline_mode<synchronous>, transform_indices = @transform_3, window_bounds = array<i64: 32, 128>}, {pipeline_mode = #tpu.pipeline_mode<synchronous>, transform_indices = @transform_4, window_bounds = array<i64: 1, 128>}, {pipeline_mode = #tpu.pipeline_mode<synchronous>, transform_indices = @transform_5, window_bounds = array<i64: 32, 128>}, {pipeline_mode = #tpu.pipeline_mode<synchronous>, transform_indices = @transform_6, window_bounds = array<i64: 32, 128>}, {pipeline_mode = #tpu.pipeline_mode<synchronous>, transform_indices = @transform_7, window_bounds = array<i64: 1, 128>}, {pipeline_mode = #tpu.pipeline_mode<synchronous>, transform_indices = @transform_8, window_bounds = array<i64: 32, 128>}, {pipeline_mode = #tpu.pipeline_mode<synchronous>, transform_indices = @transform_9, window_bounds = array<i64: 1, 128>}, {transform_indices = @transform_10, window_bounds = array<i64: 8, 128>}]} {
    %c0_i32 = arith.constant 0 : i32
    %0 = arith.cmpi eq, %arg1, %c0_i32 : i32
    %1 = arith.extui %0 : i1 to i32
    %c0_i32_0 = arith.constant 0 : i32
    %2 = arith.cmpi ne, %1, %c0_i32_0 : i32
    scf.if %2 {
      %cst_170 = arith.constant 0.000000e+00 : f32
      %478 = vector.broadcast %cst_170 : f32 to vector<2x8x32xf32>
      %c0_171 = arith.constant 0 : index
      %c0_172 = arith.constant 0 : index
      %c0_173 = arith.constant 0 : index
      %479 = vector.load %arg16[%c0_171, %c0_172, %c0_173] : memref<2x8x32xf32, #tpu.memory_space<vmem>>, vector<2x8x32xf32>
      tpu.vector_store %arg16[%c0_171, %c0_172, %c0_173], %478 {strides = array<i32>} : memref<2x8x32xf32, #tpu.memory_space<vmem>>, vector<2x8x32xf32>,
      %cst_174 = arith.constant 0.000000e+00 : f32
      %480 = vector.broadcast %cst_174 : f32 to vector<2x8x32xf32>
      %c0_175 = arith.constant 0 : index
      %c0_176 = arith.constant 0 : index
      %c0_177 = arith.constant 0 : index
      %481 = vector.load %arg17[%c0_175, %c0_176, %c0_177] : memref<2x8x32xf32, #tpu.memory_space<vmem>>, vector<2x8x32xf32>
      tpu.vector_store %arg17[%c0_175, %c0_176, %c0_177], %480 {strides = array<i32>} : memref<2x8x32xf32, #tpu.memory_space<vmem>>, vector<2x8x32xf32>,
      %cst_178 = arith.constant 0.000000e+00 : f32
      %482 = vector.broadcast %cst_178 : f32 to vector<8x32xf32>
      %c0_179 = arith.constant 0 : index
      %c0_180 = arith.constant 0 : index
      %483 = vector.load %arg18[%c0_179, %c0_180] : memref<8x32xf32, #tpu.memory_space<vmem>>, vector<8x32xf32>
      tpu.vector_store %arg18[%c0_179, %c0_180], %482 {strides = array<i32>} : memref<8x32xf32, #tpu.memory_space<vmem>>, vector<8x32xf32>,
    } else {
    }
    %c0 = arith.constant 0 : index
    %c0_1 = arith.constant 0 : index
    %3 = vector.load %arg2[%c0, %c0_1] : memref<8x1xi32, #tpu.memory_space<vmem>>, vector<8x1xi32>
    %c8_i32 = arith.constant 8 : i32
    %4 = arith.muli %arg1, %c8_i32 : i32
    %c0_2 = arith.constant 0 : index
    %c0_3 = arith.constant 0 : index
    %c0_4 = arith.constant 0 : index
    %5 = vector.load %arg3[%c0_2, %c0_3, %c0_4] : memref<8x8x16xf32, #tpu.memory_space<vmem>>, vector<8x1x16xf32>
    %6 = vector.shape_cast %5 : vector<8x1x16xf32> to vector<8x16xf32>
    %c0_5 = arith.constant 0 : index
    %c0_6 = arith.constant 0 : index
    %7 = vector.load %arg13[%c0_5, %c0_6] : memref<64x16xf32, #tpu.memory_space<vmem>>, vector<8x16xf32>
    tpu.vector_store %arg13[%c0_5, %c0_6], %6 {strides = array<i32>} : memref<64x16xf32, #tpu.memory_space<vmem>>, vector<8x16xf32>,
    %c0_7 = arith.constant 0 : index
    %c1 = arith.constant 1 : index
    %c0_8 = arith.constant 0 : index
    %8 = vector.load %arg3[%c0_7, %c1, %c0_8] : memref<8x8x16xf32, #tpu.memory_space<vmem>>, vector<8x1x16xf32>
    %9 = vector.shape_cast %8 : vector<8x1x16xf32> to vector<8x16xf32>
    %c8 = arith.constant 8 : index
    %c0_9 = arith.constant 0 : index
    %10 = vector.load %arg13[%c8, %c0_9] : memref<64x16xf32, #tpu.memory_space<vmem>>, vector<8x16xf32>
    tpu.vector_store %arg13[%c8, %c0_9], %9 {strides = array<i32>} : memref<64x16xf32, #tpu.memory_space<vmem>>, vector<8x16xf32>,
    %c0_10 = arith.constant 0 : index
    %c2 = arith.constant 2 : index
    %c0_11 = arith.constant 0 : index
    %11 = vector.load %arg3[%c0_10, %c2, %c0_11] : memref<8x8x16xf32, #tpu.memory_space<vmem>>, vector<8x1x16xf32>
    %12 = vector.shape_cast %11 : vector<8x1x16xf32> to vector<8x16xf32>
    %c16 = arith.constant 16 : index
    %c0_12 = arith.constant 0 : index
    %13 = vector.load %arg13[%c16, %c0_12] : memref<64x16xf32, #tpu.memory_space<vmem>>, vector<8x16xf32>
    tpu.vector_store %arg13[%c16, %c0_12], %12 {strides = array<i32>} : memref<64x16xf32, #tpu.memory_space<vmem>>, vector<8x16xf32>,
    %c0_13 = arith.constant 0 : index
    %c3 = arith.constant 3 : index
    %c0_14 = arith.constant 0 : index
    %14 = vector.load %arg3[%c0_13, %c3, %c0_14] : memref<8x8x16xf32, #tpu.memory_space<vmem>>, vector<8x1x16xf32>
    %15 = vector.shape_cast %14 : vector<8x1x16xf32> to vector<8x16xf32>
    %c24 = arith.constant 24 : index
    %c0_15 = arith.constant 0 : index
    %16 = vector.load %arg13[%c24, %c0_15] : memref<64x16xf32, #tpu.memory_space<vmem>>, vector<8x16xf32>
    tpu.vector_store %arg13[%c24, %c0_15], %15 {strides = array<i32>} : memref<64x16xf32, #tpu.memory_space<vmem>>, vector<8x16xf32>,
    %c0_16 = arith.constant 0 : index
    %c4 = arith.constant 4 : index
    %c0_17 = arith.constant 0 : index
    %17 = vector.load %arg3[%c0_16, %c4, %c0_17] : memref<8x8x16xf32, #tpu.memory_space<vmem>>, vector<8x1x16xf32>
    %18 = vector.shape_cast %17 : vector<8x1x16xf32> to vector<8x16xf32>
    %c32 = arith.constant 32 : index
    %c0_18 = arith.constant 0 : index
    %19 = vector.load %arg13[%c32, %c0_18] : memref<64x16xf32, #tpu.memory_space<vmem>>, vector<8x16xf32>
    tpu.vector_store %arg13[%c32, %c0_18], %18 {strides = array<i32>} : memref<64x16xf32, #tpu.memory_space<vmem>>, vector<8x16xf32>,
    %c0_19 = arith.constant 0 : index
    %c5 = arith.constant 5 : index
    %c0_20 = arith.constant 0 : index
    %20 = vector.load %arg3[%c0_19, %c5, %c0_20] : memref<8x8x16xf32, #tpu.memory_space<vmem>>, vector<8x1x16xf32>
    %21 = vector.shape_cast %20 : vector<8x1x16xf32> to vector<8x16xf32>
    %c40 = arith.constant 40 : index
    %c0_21 = arith.constant 0 : index
    %22 = vector.load %arg13[%c40, %c0_21] : memref<64x16xf32, #tpu.memory_space<vmem>>, vector<8x16xf32>
    tpu.vector_store %arg13[%c40, %c0_21], %21 {strides = array<i32>} : memref<64x16xf32, #tpu.memory_space<vmem>>, vector<8x16xf32>,
    %c0_22 = arith.constant 0 : index
    %c6 = arith.constant 6 : index
    %c0_23 = arith.constant 0 : index
    %23 = vector.load %arg3[%c0_22, %c6, %c0_23] : memref<8x8x16xf32, #tpu.memory_space<vmem>>, vector<8x1x16xf32>
    %24 = vector.shape_cast %23 : vector<8x1x16xf32> to vector<8x16xf32>
    %c48 = arith.constant 48 : index
    %c0_24 = arith.constant 0 : index
    %25 = vector.load %arg13[%c48, %c0_24] : memref<64x16xf32, #tpu.memory_space<vmem>>, vector<8x16xf32>
    tpu.vector_store %arg13[%c48, %c0_24], %24 {strides = array<i32>} : memref<64x16xf32, #tpu.memory_space<vmem>>, vector<8x16xf32>,
    %c0_25 = arith.constant 0 : index
    %c7 = arith.constant 7 : index
    %c0_26 = arith.constant 0 : index
    %26 = vector.load %arg3[%c0_25, %c7, %c0_26] : memref<8x8x16xf32, #tpu.memory_space<vmem>>, vector<8x1x16xf32>
    %27 = vector.shape_cast %26 : vector<8x1x16xf32> to vector<8x16xf32>
    %c56 = arith.constant 56 : index
    %c0_27 = arith.constant 0 : index
    %28 = vector.load %arg13[%c56, %c0_27] : memref<64x16xf32, #tpu.memory_space<vmem>>, vector<8x16xf32>
    tpu.vector_store %arg13[%c56, %c0_27], %27 {strides = array<i32>} : memref<64x16xf32, #tpu.memory_space<vmem>>, vector<8x16xf32>,
    %c0_28 = arith.constant 0 : index
    %c0_29 = arith.constant 0 : index
    %29 = vector.load %arg4[%c0_28, %c0_29] : memref<16x128xf32, #tpu.memory_space<vmem>>, vector<16x128xf32>
    %c0_30 = arith.constant 0 : index
    %c0_31 = arith.constant 0 : index
    %30 = vector.load %arg5[%c0_30, %c0_31] : memref<32x128xf32, #tpu.memory_space<vmem>>, vector<32x128xf32>
    %c0_32 = arith.constant 0 : index
    %c0_33 = arith.constant 0 : index
    %31 = vector.load %arg6[%c0_32, %c0_33] : memref<1x128xf32, #tpu.memory_space<vmem>>, vector<1x128xf32>
    %c0_34 = arith.constant 0 : index
    %c0_35 = arith.constant 0 : index
    %32 = vector.load %arg13[%c0_34, %c0_35] : memref<64x16xf32, #tpu.memory_space<vmem>>, vector<64x16xf32>
    %cst = arith.constant dense<0.000000e+00> : vector<64x128xf32>
    %33 = tpu.matmul %32, %29, %cst {dimension_numbers = #tpu.dot_dimension_numbers<[1], [0], [0], [1], [0, 0, 1, 1], [], []>} : vector<64x16xf32>, vector<16x128xf32>, vector<64x128xf32> -> vector<64x128xf32>
    %34 = vector.broadcast %31 : vector<1x128xf32> to vector<64x128xf32>
    %35 = arith.addf %33, %34 : vector<64x128xf32>
    %c0_36 = arith.constant 0 : index
    %c0_37 = arith.constant 0 : index
    %36 = vector.load %arg15[%c0_36, %c0_37] : memref<64x128xf32, #tpu.memory_space<vmem>>, vector<64x128xf32>
    tpu.vector_store %arg15[%c0_36, %c0_37], %35 {strides = array<i32>} : memref<64x128xf32, #tpu.memory_space<vmem>>, vector<64x128xf32>,
    %c0_38 = arith.constant 0 : index
    %c0_39 = arith.constant 0 : index
    %c0_40 = arith.constant 0 : index
    %37 = vector.load %arg16[%c0_38, %c0_39, %c0_40] : memref<2x8x32xf32, #tpu.memory_space<vmem>>, vector<1x8x32xf32>
    %38 = vector.shape_cast %37 : vector<1x8x32xf32> to vector<8x32xf32>
    %c0_41 = arith.constant 0 : index
    %c0_42 = arith.constant 0 : index
    %c0_43 = arith.constant 0 : index
    %39 = vector.load %arg17[%c0_41, %c0_42, %c0_43] : memref<2x8x32xf32, #tpu.memory_space<vmem>>, vector<1x8x32xf32>
    %40 = vector.shape_cast %39 : vector<1x8x32xf32> to vector<8x32xf32>
    %c0_i32_44 = arith.constant 0 : i32
    %c8_i32_45 = arith.constant 8 : i32
    %41 = arith.muli %c0_i32_44, %c8_i32_45 : i32
    %42 = tpu.assume_multiple %41, 8 : i32
    %43 = arith.index_cast %42 : i32 to index
    %c0_46 = arith.constant 0 : index
    %44 = vector.load %arg15[%43, %c0_46] : memref<64x128xf32, #tpu.memory_space<vmem>>, vector<8x128xf32>
    %cst_47 = arith.constant dense<0.000000e+00> : vector<8x128xf32>
    %45 = tpu.matmul %38, %30, %cst_47 {dimension_numbers = #tpu.dot_dimension_numbers<[1], [0], [0], [1], [0, 0, 1, 1], [], []>} : vector<8x32xf32>, vector<32x128xf32>, vector<8x128xf32> -> vector<8x128xf32>
    %46 = arith.addf %44, %45 : vector<8x128xf32>
    %47 = arith.negf %46 : vector<8x128xf32>
    %48 = math.exp %47 : vector<8x128xf32>
    %cst_48 = arith.constant 1.000000e+00 : f32
    %49 = vector.broadcast %cst_48 : f32 to vector<8x128xf32>
    %50 = arith.addf %49, %48 : vector<8x128xf32>
    %51 = arith.divf %49, %50 : vector<8x128xf32>
    %52 = math.tanh %46 : vector<8x128xf32>
    %53 = vector.extract_strided_slice %51 {offsets = [0, 0], sizes = [8, 32], strides = [1, 1]} : vector<8x128xf32> to vector<8x32xf32>
    %54 = vector.extract_strided_slice %51 {offsets = [0, 32], sizes = [8, 32], strides = [1, 1]} : vector<8x128xf32> to vector<8x32xf32>
    %55 = vector.extract_strided_slice %52 {offsets = [0, 64], sizes = [8, 32], strides = [1, 1]} : vector<8x128xf32> to vector<8x32xf32>
    %56 = vector.extract_strided_slice %51 {offsets = [0, 96], sizes = [8, 32], strides = [1, 1]} : vector<8x128xf32> to vector<8x32xf32>
    %57 = arith.mulf %54, %40 : vector<8x32xf32>
    %58 = arith.mulf %53, %55 : vector<8x32xf32>
    %59 = arith.addf %57, %58 : vector<8x32xf32>
    %60 = math.tanh %59 : vector<8x32xf32>
    %61 = arith.mulf %56, %60 : vector<8x32xf32>
    %62 = arith.index_cast %42 : i32 to index
    %c0_49 = arith.constant 0 : index
    %63 = vector.load %arg14[%62, %c0_49] : memref<64x32xf32, #tpu.memory_space<vmem>>, vector<8x32xf32>
    tpu.vector_store %arg14[%62, %c0_49], %61 {strides = array<i32>} : memref<64x32xf32, #tpu.memory_space<vmem>>, vector<8x32xf32>,
    %c1_i32 = arith.constant 1 : i32
    %c8_i32_50 = arith.constant 8 : i32
    %64 = arith.muli %c1_i32, %c8_i32_50 : i32
    %65 = tpu.assume_multiple %64, 8 : i32
    %66 = arith.index_cast %65 : i32 to index
    %c0_51 = arith.constant 0 : index
    %67 = vector.load %arg15[%66, %c0_51] : memref<64x128xf32, #tpu.memory_space<vmem>>, vector<8x128xf32>
    %cst_52 = arith.constant dense<0.000000e+00> : vector<8x128xf32>
    %68 = tpu.matmul %61, %30, %cst_52 {dimension_numbers = #tpu.dot_dimension_numbers<[1], [0], [0], [1], [0, 0, 1, 1], [], []>} : vector<8x32xf32>, vector<32x128xf32>, vector<8x128xf32> -> vector<8x128xf32>
    %69 = arith.addf %67, %68 : vector<8x128xf32>
    %70 = arith.negf %69 : vector<8x128xf32>
    %71 = math.exp %70 : vector<8x128xf32>
    %cst_53 = arith.constant 1.000000e+00 : f32
    %72 = vector.broadcast %cst_53 : f32 to vector<8x128xf32>
    %73 = arith.addf %72, %71 : vector<8x128xf32>
    %74 = arith.divf %72, %73 : vector<8x128xf32>
    %75 = math.tanh %69 : vector<8x128xf32>
    %76 = vector.extract_strided_slice %74 {offsets = [0, 0], sizes = [8, 32], strides = [1, 1]} : vector<8x128xf32> to vector<8x32xf32>
    %77 = vector.extract_strided_slice %74 {offsets = [0, 32], sizes = [8, 32], strides = [1, 1]} : vector<8x128xf32> to vector<8x32xf32>
    %78 = vector.extract_strided_slice %75 {offsets = [0, 64], sizes = [8, 32], strides = [1, 1]} : vector<8x128xf32> to vector<8x32xf32>
    %79 = vector.extract_strided_slice %74 {offsets = [0, 96], sizes = [8, 32], strides = [1, 1]} : vector<8x128xf32> to vector<8x32xf32>
    %80 = arith.mulf %77, %59 : vector<8x32xf32>
    %81 = arith.mulf %76, %78 : vector<8x32xf32>
    %82 = arith.addf %80, %81 : vector<8x32xf32>
    %83 = math.tanh %82 : vector<8x32xf32>
    %84 = arith.mulf %79, %83 : vector<8x32xf32>
    %85 = arith.index_cast %65 : i32 to index
    %c0_54 = arith.constant 0 : index
    %86 = vector.load %arg14[%85, %c0_54] : memref<64x32xf32, #tpu.memory_space<vmem>>, vector<8x32xf32>
    tpu.vector_store %arg14[%85, %c0_54], %84 {strides = array<i32>} : memref<64x32xf32, #tpu.memory_space<vmem>>, vector<8x32xf32>,
    %c2_i32 = arith.constant 2 : i32
    %c8_i32_55 = arith.constant 8 : i32
    %87 = arith.muli %c2_i32, %c8_i32_55 : i32
    %88 = tpu.assume_multiple %87, 8 : i32
    %89 = arith.index_cast %88 : i32 to index
    %c0_56 = arith.constant 0 : index
    %90 = vector.load %arg15[%89, %c0_56] : memref<64x128xf32, #tpu.memory_space<vmem>>, vector<8x128xf32>
    %cst_57 = arith.constant dense<0.000000e+00> : vector<8x128xf32>
    %91 = tpu.matmul %84, %30, %cst_57 {dimension_numbers = #tpu.dot_dimension_numbers<[1], [0], [0], [1], [0, 0, 1, 1], [], []>} : vector<8x32xf32>, vector<32x128xf32>, vector<8x128xf32> -> vector<8x128xf32>
    %92 = arith.addf %90, %91 : vector<8x128xf32>
    %93 = arith.negf %92 : vector<8x128xf32>
    %94 = math.exp %93 : vector<8x128xf32>
    %cst_58 = arith.constant 1.000000e+00 : f32
    %95 = vector.broadcast %cst_58 : f32 to vector<8x128xf32>
    %96 = arith.addf %95, %94 : vector<8x128xf32>
    %97 = arith.divf %95, %96 : vector<8x128xf32>
    %98 = math.tanh %92 : vector<8x128xf32>
    %99 = vector.extract_strided_slice %97 {offsets = [0, 0], sizes = [8, 32], strides = [1, 1]} : vector<8x128xf32> to vector<8x32xf32>
    %100 = vector.extract_strided_slice %97 {offsets = [0, 32], sizes = [8, 32], strides = [1, 1]} : vector<8x128xf32> to vector<8x32xf32>
    %101 = vector.extract_strided_slice %98 {offsets = [0, 64], sizes = [8, 32], strides = [1, 1]} : vector<8x128xf32> to vector<8x32xf32>
    %102 = vector.extract_strided_slice %97 {offsets = [0, 96], sizes = [8, 32], strides = [1, 1]} : vector<8x128xf32> to vector<8x32xf32>
    %103 = arith.mulf %100, %82 : vector<8x32xf32>
    %104 = arith.mulf %99, %101 : vector<8x32xf32>
    %105 = arith.addf %103, %104 : vector<8x32xf32>
    %106 = math.tanh %105 : vector<8x32xf32>
    %107 = arith.mulf %102, %106 : vector<8x32xf32>
    %108 = arith.index_cast %88 : i32 to index
    %c0_59 = arith.constant 0 : index
    %109 = vector.load %arg14[%108, %c0_59] : memref<64x32xf32, #tpu.memory_space<vmem>>, vector<8x32xf32>
    tpu.vector_store %arg14[%108, %c0_59], %107 {strides = array<i32>} : memref<64x32xf32, #tpu.memory_space<vmem>>, vector<8x32xf32>,
    %c3_i32 = arith.constant 3 : i32
    %c8_i32_60 = arith.constant 8 : i32
    %110 = arith.muli %c3_i32, %c8_i32_60 : i32
    %111 = tpu.assume_multiple %110, 8 : i32
    %112 = arith.index_cast %111 : i32 to index
    %c0_61 = arith.constant 0 : index
    %113 = vector.load %arg15[%112, %c0_61] : memref<64x128xf32, #tpu.memory_space<vmem>>, vector<8x128xf32>
    %cst_62 = arith.constant dense<0.000000e+00> : vector<8x128xf32>
    %114 = tpu.matmul %107, %30, %cst_62 {dimension_numbers = #tpu.dot_dimension_numbers<[1], [0], [0], [1], [0, 0, 1, 1], [], []>} : vector<8x32xf32>, vector<32x128xf32>, vector<8x128xf32> -> vector<8x128xf32>
    %115 = arith.addf %113, %114 : vector<8x128xf32>
    %116 = arith.negf %115 : vector<8x128xf32>
    %117 = math.exp %116 : vector<8x128xf32>
    %cst_63 = arith.constant 1.000000e+00 : f32
    %118 = vector.broadcast %cst_63 : f32 to vector<8x128xf32>
    %119 = arith.addf %118, %117 : vector<8x128xf32>
    %120 = arith.divf %118, %119 : vector<8x128xf32>
    %121 = math.tanh %115 : vector<8x128xf32>
    %122 = vector.extract_strided_slice %120 {offsets = [0, 0], sizes = [8, 32], strides = [1, 1]} : vector<8x128xf32> to vector<8x32xf32>
    %123 = vector.extract_strided_slice %120 {offsets = [0, 32], sizes = [8, 32], strides = [1, 1]} : vector<8x128xf32> to vector<8x32xf32>
    %124 = vector.extract_strided_slice %121 {offsets = [0, 64], sizes = [8, 32], strides = [1, 1]} : vector<8x128xf32> to vector<8x32xf32>
    %125 = vector.extract_strided_slice %120 {offsets = [0, 96], sizes = [8, 32], strides = [1, 1]} : vector<8x128xf32> to vector<8x32xf32>
    %126 = arith.mulf %123, %105 : vector<8x32xf32>
    %127 = arith.mulf %122, %124 : vector<8x32xf32>
    %128 = arith.addf %126, %127 : vector<8x32xf32>
    %129 = math.tanh %128 : vector<8x32xf32>
    %130 = arith.mulf %125, %129 : vector<8x32xf32>
    %131 = arith.index_cast %111 : i32 to index
    %c0_64 = arith.constant 0 : index
    %132 = vector.load %arg14[%131, %c0_64] : memref<64x32xf32, #tpu.memory_space<vmem>>, vector<8x32xf32>
    tpu.vector_store %arg14[%131, %c0_64], %130 {strides = array<i32>} : memref<64x32xf32, #tpu.memory_space<vmem>>, vector<8x32xf32>,
    %c4_i32 = arith.constant 4 : i32
    %c8_i32_65 = arith.constant 8 : i32
    %133 = arith.muli %c4_i32, %c8_i32_65 : i32
    %134 = tpu.assume_multiple %133, 8 : i32
    %135 = arith.index_cast %134 : i32 to index
    %c0_66 = arith.constant 0 : index
    %136 = vector.load %arg15[%135, %c0_66] : memref<64x128xf32, #tpu.memory_space<vmem>>, vector<8x128xf32>
    %cst_67 = arith.constant dense<0.000000e+00> : vector<8x128xf32>
    %137 = tpu.matmul %130, %30, %cst_67 {dimension_numbers = #tpu.dot_dimension_numbers<[1], [0], [0], [1], [0, 0, 1, 1], [], []>} : vector<8x32xf32>, vector<32x128xf32>, vector<8x128xf32> -> vector<8x128xf32>
    %138 = arith.addf %136, %137 : vector<8x128xf32>
    %139 = arith.negf %138 : vector<8x128xf32>
    %140 = math.exp %139 : vector<8x128xf32>
    %cst_68 = arith.constant 1.000000e+00 : f32
    %141 = vector.broadcast %cst_68 : f32 to vector<8x128xf32>
    %142 = arith.addf %141, %140 : vector<8x128xf32>
    %143 = arith.divf %141, %142 : vector<8x128xf32>
    %144 = math.tanh %138 : vector<8x128xf32>
    %145 = vector.extract_strided_slice %143 {offsets = [0, 0], sizes = [8, 32], strides = [1, 1]} : vector<8x128xf32> to vector<8x32xf32>
    %146 = vector.extract_strided_slice %143 {offsets = [0, 32], sizes = [8, 32], strides = [1, 1]} : vector<8x128xf32> to vector<8x32xf32>
    %147 = vector.extract_strided_slice %144 {offsets = [0, 64], sizes = [8, 32], strides = [1, 1]} : vector<8x128xf32> to vector<8x32xf32>
    %148 = vector.extract_strided_slice %143 {offsets = [0, 96], sizes = [8, 32], strides = [1, 1]} : vector<8x128xf32> to vector<8x32xf32>
    %149 = arith.mulf %146, %128 : vector<8x32xf32>
    %150 = arith.mulf %145, %147 : vector<8x32xf32>
    %151 = arith.addf %149, %150 : vector<8x32xf32>
    %152 = math.tanh %151 : vector<8x32xf32>
    %153 = arith.mulf %148, %152 : vector<8x32xf32>
    %154 = arith.index_cast %134 : i32 to index
    %c0_69 = arith.constant 0 : index
    %155 = vector.load %arg14[%154, %c0_69] : memref<64x32xf32, #tpu.memory_space<vmem>>, vector<8x32xf32>
    tpu.vector_store %arg14[%154, %c0_69], %153 {strides = array<i32>} : memref<64x32xf32, #tpu.memory_space<vmem>>, vector<8x32xf32>,
    %c5_i32 = arith.constant 5 : i32
    %c8_i32_70 = arith.constant 8 : i32
    %156 = arith.muli %c5_i32, %c8_i32_70 : i32
    %157 = tpu.assume_multiple %156, 8 : i32
    %158 = arith.index_cast %157 : i32 to index
    %c0_71 = arith.constant 0 : index
    %159 = vector.load %arg15[%158, %c0_71] : memref<64x128xf32, #tpu.memory_space<vmem>>, vector<8x128xf32>
    %cst_72 = arith.constant dense<0.000000e+00> : vector<8x128xf32>
    %160 = tpu.matmul %153, %30, %cst_72 {dimension_numbers = #tpu.dot_dimension_numbers<[1], [0], [0], [1], [0, 0, 1, 1], [], []>} : vector<8x32xf32>, vector<32x128xf32>, vector<8x128xf32> -> vector<8x128xf32>
    %161 = arith.addf %159, %160 : vector<8x128xf32>
    %162 = arith.negf %161 : vector<8x128xf32>
    %163 = math.exp %162 : vector<8x128xf32>
    %cst_73 = arith.constant 1.000000e+00 : f32
    %164 = vector.broadcast %cst_73 : f32 to vector<8x128xf32>
    %165 = arith.addf %164, %163 : vector<8x128xf32>
    %166 = arith.divf %164, %165 : vector<8x128xf32>
    %167 = math.tanh %161 : vector<8x128xf32>
    %168 = vector.extract_strided_slice %166 {offsets = [0, 0], sizes = [8, 32], strides = [1, 1]} : vector<8x128xf32> to vector<8x32xf32>
    %169 = vector.extract_strided_slice %166 {offsets = [0, 32], sizes = [8, 32], strides = [1, 1]} : vector<8x128xf32> to vector<8x32xf32>
    %170 = vector.extract_strided_slice %167 {offsets = [0, 64], sizes = [8, 32], strides = [1, 1]} : vector<8x128xf32> to vector<8x32xf32>
    %171 = vector.extract_strided_slice %166 {offsets = [0, 96], sizes = [8, 32], strides = [1, 1]} : vector<8x128xf32> to vector<8x32xf32>
    %172 = arith.mulf %169, %151 : vector<8x32xf32>
    %173 = arith.mulf %168, %170 : vector<8x32xf32>
    %174 = arith.addf %172, %173 : vector<8x32xf32>
    %175 = math.tanh %174 : vector<8x32xf32>
    %176 = arith.mulf %171, %175 : vector<8x32xf32>
    %177 = arith.index_cast %157 : i32 to index
    %c0_74 = arith.constant 0 : index
    %178 = vector.load %arg14[%177, %c0_74] : memref<64x32xf32, #tpu.memory_space<vmem>>, vector<8x32xf32>
    tpu.vector_store %arg14[%177, %c0_74], %176 {strides = array<i32>} : memref<64x32xf32, #tpu.memory_space<vmem>>, vector<8x32xf32>,
    %c6_i32 = arith.constant 6 : i32
    %c8_i32_75 = arith.constant 8 : i32
    %179 = arith.muli %c6_i32, %c8_i32_75 : i32
    %180 = tpu.assume_multiple %179, 8 : i32
    %181 = arith.index_cast %180 : i32 to index
    %c0_76 = arith.constant 0 : index
    %182 = vector.load %arg15[%181, %c0_76] : memref<64x128xf32, #tpu.memory_space<vmem>>, vector<8x128xf32>
    %cst_77 = arith.constant dense<0.000000e+00> : vector<8x128xf32>
    %183 = tpu.matmul %176, %30, %cst_77 {dimension_numbers = #tpu.dot_dimension_numbers<[1], [0], [0], [1], [0, 0, 1, 1], [], []>} : vector<8x32xf32>, vector<32x128xf32>, vector<8x128xf32> -> vector<8x128xf32>
    %184 = arith.addf %182, %183 : vector<8x128xf32>
    %185 = arith.negf %184 : vector<8x128xf32>
    %186 = math.exp %185 : vector<8x128xf32>
    %cst_78 = arith.constant 1.000000e+00 : f32
    %187 = vector.broadcast %cst_78 : f32 to vector<8x128xf32>
    %188 = arith.addf %187, %186 : vector<8x128xf32>
    %189 = arith.divf %187, %188 : vector<8x128xf32>
    %190 = math.tanh %184 : vector<8x128xf32>
    %191 = vector.extract_strided_slice %189 {offsets = [0, 0], sizes = [8, 32], strides = [1, 1]} : vector<8x128xf32> to vector<8x32xf32>
    %192 = vector.extract_strided_slice %189 {offsets = [0, 32], sizes = [8, 32], strides = [1, 1]} : vector<8x128xf32> to vector<8x32xf32>
    %193 = vector.extract_strided_slice %190 {offsets = [0, 64], sizes = [8, 32], strides = [1, 1]} : vector<8x128xf32> to vector<8x32xf32>
    %194 = vector.extract_strided_slice %189 {offsets = [0, 96], sizes = [8, 32], strides = [1, 1]} : vector<8x128xf32> to vector<8x32xf32>
    %195 = arith.mulf %192, %174 : vector<8x32xf32>
    %196 = arith.mulf %191, %193 : vector<8x32xf32>
    %197 = arith.addf %195, %196 : vector<8x32xf32>
    %198 = math.tanh %197 : vector<8x32xf32>
    %199 = arith.mulf %194, %198 : vector<8x32xf32>
    %200 = arith.index_cast %180 : i32 to index
    %c0_79 = arith.constant 0 : index
    %201 = vector.load %arg14[%200, %c0_79] : memref<64x32xf32, #tpu.memory_space<vmem>>, vector<8x32xf32>
    tpu.vector_store %arg14[%200, %c0_79], %199 {strides = array<i32>} : memref<64x32xf32, #tpu.memory_space<vmem>>, vector<8x32xf32>,
    %c7_i32 = arith.constant 7 : i32
    %c8_i32_80 = arith.constant 8 : i32
    %202 = arith.muli %c7_i32, %c8_i32_80 : i32
    %203 = tpu.assume_multiple %202, 8 : i32
    %204 = arith.index_cast %203 : i32 to index
    %c0_81 = arith.constant 0 : index
    %205 = vector.load %arg15[%204, %c0_81] : memref<64x128xf32, #tpu.memory_space<vmem>>, vector<8x128xf32>
    %cst_82 = arith.constant dense<0.000000e+00> : vector<8x128xf32>
    %206 = tpu.matmul %199, %30, %cst_82 {dimension_numbers = #tpu.dot_dimension_numbers<[1], [0], [0], [1], [0, 0, 1, 1], [], []>} : vector<8x32xf32>, vector<32x128xf32>, vector<8x128xf32> -> vector<8x128xf32>
    %207 = arith.addf %205, %206 : vector<8x128xf32>
    %208 = arith.negf %207 : vector<8x128xf32>
    %209 = math.exp %208 : vector<8x128xf32>
    %cst_83 = arith.constant 1.000000e+00 : f32
    %210 = vector.broadcast %cst_83 : f32 to vector<8x128xf32>
    %211 = arith.addf %210, %209 : vector<8x128xf32>
    %212 = arith.divf %210, %211 : vector<8x128xf32>
    %213 = math.tanh %207 : vector<8x128xf32>
    %214 = vector.extract_strided_slice %212 {offsets = [0, 0], sizes = [8, 32], strides = [1, 1]} : vector<8x128xf32> to vector<8x32xf32>
    %215 = vector.extract_strided_slice %212 {offsets = [0, 32], sizes = [8, 32], strides = [1, 1]} : vector<8x128xf32> to vector<8x32xf32>
    %216 = vector.extract_strided_slice %213 {offsets = [0, 64], sizes = [8, 32], strides = [1, 1]} : vector<8x128xf32> to vector<8x32xf32>
    %217 = vector.extract_strided_slice %212 {offsets = [0, 96], sizes = [8, 32], strides = [1, 1]} : vector<8x128xf32> to vector<8x32xf32>
    %218 = arith.mulf %215, %197 : vector<8x32xf32>
    %219 = arith.mulf %214, %216 : vector<8x32xf32>
    %220 = arith.addf %218, %219 : vector<8x32xf32>
    %221 = math.tanh %220 : vector<8x32xf32>
    %222 = arith.mulf %217, %221 : vector<8x32xf32>
    %223 = arith.index_cast %203 : i32 to index
    %c0_84 = arith.constant 0 : index
    %224 = vector.load %arg14[%223, %c0_84] : memref<64x32xf32, #tpu.memory_space<vmem>>, vector<8x32xf32>
    tpu.vector_store %arg14[%223, %c0_84], %222 {strides = array<i32>} : memref<64x32xf32, #tpu.memory_space<vmem>>, vector<8x32xf32>,
    %c8_i32_85 = arith.constant 8 : i32
    %c0_86 = arith.constant 0 : index
    %c0_87 = arith.constant 0 : index
    %c0_88 = arith.constant 0 : index
    %225 = vector.load %arg16[%c0_86, %c0_87, %c0_88] : memref<2x8x32xf32, #tpu.memory_space<vmem>>, vector<1x8x32xf32>
    %226 = vector.shape_cast %225 : vector<1x8x32xf32> to vector<8x32xf32>
    %227 = vector.shape_cast %222 : vector<8x32xf32> to vector<1x8x32xf32>
    tpu.vector_store %arg16[%c0_86, %c0_87, %c0_88], %227 {strides = array<i32>} : memref<2x8x32xf32, #tpu.memory_space<vmem>>, vector<1x8x32xf32>,
    %c0_89 = arith.constant 0 : index
    %c0_90 = arith.constant 0 : index
    %c0_91 = arith.constant 0 : index
    %228 = vector.load %arg17[%c0_89, %c0_90, %c0_91] : memref<2x8x32xf32, #tpu.memory_space<vmem>>, vector<1x8x32xf32>
    %229 = vector.shape_cast %228 : vector<1x8x32xf32> to vector<8x32xf32>
    %230 = vector.shape_cast %220 : vector<8x32xf32> to vector<1x8x32xf32>
    tpu.vector_store %arg17[%c0_89, %c0_90, %c0_91], %230 {strides = array<i32>} : memref<2x8x32xf32, #tpu.memory_space<vmem>>, vector<1x8x32xf32>,
    %c0_92 = arith.constant 0 : index
    %c0_93 = arith.constant 0 : index
    %231 = vector.load %arg7[%c0_92, %c0_93] : memref<32x128xf32, #tpu.memory_space<vmem>>, vector<32x128xf32>
    %c0_94 = arith.constant 0 : index
    %c0_95 = arith.constant 0 : index
    %232 = vector.load %arg8[%c0_94, %c0_95] : memref<32x128xf32, #tpu.memory_space<vmem>>, vector<32x128xf32>
    %c0_96 = arith.constant 0 : index
    %c0_97 = arith.constant 0 : index
    %233 = vector.load %arg9[%c0_96, %c0_97] : memref<1x128xf32, #tpu.memory_space<vmem>>, vector<1x128xf32>
    %c0_98 = arith.constant 0 : index
    %c0_99 = arith.constant 0 : index
    %234 = vector.load %arg14[%c0_98, %c0_99] : memref<64x32xf32, #tpu.memory_space<vmem>>, vector<64x32xf32>
    %cst_100 = arith.constant dense<0.000000e+00> : vector<64x128xf32>
    %235 = tpu.matmul %234, %231, %cst_100 {dimension_numbers = #tpu.dot_dimension_numbers<[1], [0], [0], [1], [0, 0, 1, 1], [], []>} : vector<64x32xf32>, vector<32x128xf32>, vector<64x128xf32> -> vector<64x128xf32>
    %236 = vector.broadcast %233 : vector<1x128xf32> to vector<64x128xf32>
    %237 = arith.addf %235, %236 : vector<64x128xf32>
    %c0_101 = arith.constant 0 : index
    %c0_102 = arith.constant 0 : index
    %238 = vector.load %arg15[%c0_101, %c0_102] : memref<64x128xf32, #tpu.memory_space<vmem>>, vector<64x128xf32>
    tpu.vector_store %arg15[%c0_101, %c0_102], %237 {strides = array<i32>} : memref<64x128xf32, #tpu.memory_space<vmem>>, vector<64x128xf32>,
    %c1_103 = arith.constant 1 : index
    %c0_104 = arith.constant 0 : index
    %c0_105 = arith.constant 0 : index
    %239 = vector.load %arg16[%c1_103, %c0_104, %c0_105] : memref<2x8x32xf32, #tpu.memory_space<vmem>>, vector<1x8x32xf32>
    %240 = vector.shape_cast %239 : vector<1x8x32xf32> to vector<8x32xf32>
    %c1_106 = arith.constant 1 : index
    %c0_107 = arith.constant 0 : index
    %c0_108 = arith.constant 0 : index
    %241 = vector.load %arg17[%c1_106, %c0_107, %c0_108] : memref<2x8x32xf32, #tpu.memory_space<vmem>>, vector<1x8x32xf32>
    %242 = vector.shape_cast %241 : vector<1x8x32xf32> to vector<8x32xf32>
    %c0_109 = arith.constant 0 : index
    %c0_110 = arith.constant 0 : index
    %243 = vector.load %arg18[%c0_109, %c0_110] : memref<8x32xf32, #tpu.memory_space<vmem>>, vector<8x32xf32>
    %c0_i32_111 = arith.constant 0 : i32
    %c8_i32_112 = arith.constant 8 : i32
    %244 = arith.muli %c0_i32_111, %c8_i32_112 : i32
    %245 = tpu.assume_multiple %244, 8 : i32
    %246 = arith.index_cast %245 : i32 to index
    %c0_113 = arith.constant 0 : index
    %247 = vector.load %arg15[%246, %c0_113] : memref<64x128xf32, #tpu.memory_space<vmem>>, vector<8x128xf32>
    %cst_114 = arith.constant dense<0.000000e+00> : vector<8x128xf32>
    %248 = tpu.matmul %240, %232, %cst_114 {dimension_numbers = #tpu.dot_dimension_numbers<[1], [0], [0], [1], [0, 0, 1, 1], [], []>} : vector<8x32xf32>, vector<32x128xf32>, vector<8x128xf32> -> vector<8x128xf32>
    %249 = arith.addf %247, %248 : vector<8x128xf32>
    %250 = arith.negf %249 : vector<8x128xf32>
    %251 = math.exp %250 : vector<8x128xf32>
    %cst_115 = arith.constant 1.000000e+00 : f32
    %252 = vector.broadcast %cst_115 : f32 to vector<8x128xf32>
    %253 = arith.addf %252, %251 : vector<8x128xf32>
    %254 = arith.divf %252, %253 : vector<8x128xf32>
    %255 = math.tanh %249 : vector<8x128xf32>
    %256 = vector.extract_strided_slice %254 {offsets = [0, 0], sizes = [8, 32], strides = [1, 1]} : vector<8x128xf32> to vector<8x32xf32>
    %257 = vector.extract_strided_slice %254 {offsets = [0, 32], sizes = [8, 32], strides = [1, 1]} : vector<8x128xf32> to vector<8x32xf32>
    %258 = vector.extract_strided_slice %255 {offsets = [0, 64], sizes = [8, 32], strides = [1, 1]} : vector<8x128xf32> to vector<8x32xf32>
    %259 = vector.extract_strided_slice %254 {offsets = [0, 96], sizes = [8, 32], strides = [1, 1]} : vector<8x128xf32> to vector<8x32xf32>
    %260 = arith.mulf %257, %242 : vector<8x32xf32>
    %261 = arith.mulf %256, %258 : vector<8x32xf32>
    %262 = arith.addf %260, %261 : vector<8x32xf32>
    %263 = math.tanh %262 : vector<8x32xf32>
    %264 = arith.mulf %259, %263 : vector<8x32xf32>
    %265 = arith.addi %4, %c0_i32_111 : i32
    %c1_i32_116 = arith.constant 1 : i32
    %266 = arith.addi %265, %c1_i32_116 : i32
    %267 = vector.broadcast %266 : i32 to vector<8x1xi32>
    %268 = arith.cmpi eq, %3, %267 : vector<8x1xi32>
    %269 = vector.shape_cast %268 : vector<8x1xi1> to vector<8x1xi1>
    %270 = vector.broadcast %269 : vector<8x1xi1> to vector<8x32xi1>
    %271 = arith.select %270, %264, %243 : vector<8x32xi1>, vector<8x32xf32>
    %c1_i32_117 = arith.constant 1 : i32
    %c8_i32_118 = arith.constant 8 : i32
    %272 = arith.muli %c1_i32_117, %c8_i32_118 : i32
    %273 = tpu.assume_multiple %272, 8 : i32
    %274 = arith.index_cast %273 : i32 to index
    %c0_119 = arith.constant 0 : index
    %275 = vector.load %arg15[%274, %c0_119] : memref<64x128xf32, #tpu.memory_space<vmem>>, vector<8x128xf32>
    %cst_120 = arith.constant dense<0.000000e+00> : vector<8x128xf32>
    %276 = tpu.matmul %264, %232, %cst_120 {dimension_numbers = #tpu.dot_dimension_numbers<[1], [0], [0], [1], [0, 0, 1, 1], [], []>} : vector<8x32xf32>, vector<32x128xf32>, vector<8x128xf32> -> vector<8x128xf32>
    %277 = arith.addf %275, %276 : vector<8x128xf32>
    %278 = arith.negf %277 : vector<8x128xf32>
    %279 = math.exp %278 : vector<8x128xf32>
    %cst_121 = arith.constant 1.000000e+00 : f32
    %280 = vector.broadcast %cst_121 : f32 to vector<8x128xf32>
    %281 = arith.addf %280, %279 : vector<8x128xf32>
    %282 = arith.divf %280, %281 : vector<8x128xf32>
    %283 = math.tanh %277 : vector<8x128xf32>
    %284 = vector.extract_strided_slice %282 {offsets = [0, 0], sizes = [8, 32], strides = [1, 1]} : vector<8x128xf32> to vector<8x32xf32>
    %285 = vector.extract_strided_slice %282 {offsets = [0, 32], sizes = [8, 32], strides = [1, 1]} : vector<8x128xf32> to vector<8x32xf32>
    %286 = vector.extract_strided_slice %283 {offsets = [0, 64], sizes = [8, 32], strides = [1, 1]} : vector<8x128xf32> to vector<8x32xf32>
    %287 = vector.extract_strided_slice %282 {offsets = [0, 96], sizes = [8, 32], strides = [1, 1]} : vector<8x128xf32> to vector<8x32xf32>
    %288 = arith.mulf %285, %262 : vector<8x32xf32>
    %289 = arith.mulf %284, %286 : vector<8x32xf32>
    %290 = arith.addf %288, %289 : vector<8x32xf32>
    %291 = math.tanh %290 : vector<8x32xf32>
    %292 = arith.mulf %287, %291 : vector<8x32xf32>
    %293 = arith.addi %4, %c1_i32_117 : i32
    %c1_i32_122 = arith.constant 1 : i32
    %294 = arith.addi %293, %c1_i32_122 : i32
    %295 = vector.broadcast %294 : i32 to vector<8x1xi32>
    %296 = arith.cmpi eq, %3, %295 : vector<8x1xi32>
    %297 = vector.shape_cast %296 : vector<8x1xi1> to vector<8x1xi1>
    %298 = vector.broadcast %297 : vector<8x1xi1> to vector<8x32xi1>
    %299 = arith.select %298, %292, %271 : vector<8x32xi1>, vector<8x32xf32>
    %c2_i32_123 = arith.constant 2 : i32
    %c8_i32_124 = arith.constant 8 : i32
    %300 = arith.muli %c2_i32_123, %c8_i32_124 : i32
    %301 = tpu.assume_multiple %300, 8 : i32
    %302 = arith.index_cast %301 : i32 to index
    %c0_125 = arith.constant 0 : index
    %303 = vector.load %arg15[%302, %c0_125] : memref<64x128xf32, #tpu.memory_space<vmem>>, vector<8x128xf32>
    %cst_126 = arith.constant dense<0.000000e+00> : vector<8x128xf32>
    %304 = tpu.matmul %292, %232, %cst_126 {dimension_numbers = #tpu.dot_dimension_numbers<[1], [0], [0], [1], [0, 0, 1, 1], [], []>} : vector<8x32xf32>, vector<32x128xf32>, vector<8x128xf32> -> vector<8x128xf32>
    %305 = arith.addf %303, %304 : vector<8x128xf32>
    %306 = arith.negf %305 : vector<8x128xf32>
    %307 = math.exp %306 : vector<8x128xf32>
    %cst_127 = arith.constant 1.000000e+00 : f32
    %308 = vector.broadcast %cst_127 : f32 to vector<8x128xf32>
    %309 = arith.addf %308, %307 : vector<8x128xf32>
    %310 = arith.divf %308, %309 : vector<8x128xf32>
    %311 = math.tanh %305 : vector<8x128xf32>
    %312 = vector.extract_strided_slice %310 {offsets = [0, 0], sizes = [8, 32], strides = [1, 1]} : vector<8x128xf32> to vector<8x32xf32>
    %313 = vector.extract_strided_slice %310 {offsets = [0, 32], sizes = [8, 32], strides = [1, 1]} : vector<8x128xf32> to vector<8x32xf32>
    %314 = vector.extract_strided_slice %311 {offsets = [0, 64], sizes = [8, 32], strides = [1, 1]} : vector<8x128xf32> to vector<8x32xf32>
    %315 = vector.extract_strided_slice %310 {offsets = [0, 96], sizes = [8, 32], strides = [1, 1]} : vector<8x128xf32> to vector<8x32xf32>
    %316 = arith.mulf %313, %290 : vector<8x32xf32>
    %317 = arith.mulf %312, %314 : vector<8x32xf32>
    %318 = arith.addf %316, %317 : vector<8x32xf32>
    %319 = math.tanh %318 : vector<8x32xf32>
    %320 = arith.mulf %315, %319 : vector<8x32xf32>
    %321 = arith.addi %4, %c2_i32_123 : i32
    %c1_i32_128 = arith.constant 1 : i32
    %322 = arith.addi %321, %c1_i32_128 : i32
    %323 = vector.broadcast %322 : i32 to vector<8x1xi32>
    %324 = arith.cmpi eq, %3, %323 : vector<8x1xi32>
    %325 = vector.shape_cast %324 : vector<8x1xi1> to vector<8x1xi1>
    %326 = vector.broadcast %325 : vector<8x1xi1> to vector<8x32xi1>
    %327 = arith.select %326, %320, %299 : vector<8x32xi1>, vector<8x32xf32>
    %c3_i32_129 = arith.constant 3 : i32
    %c8_i32_130 = arith.constant 8 : i32
    %328 = arith.muli %c3_i32_129, %c8_i32_130 : i32
    %329 = tpu.assume_multiple %328, 8 : i32
    %330 = arith.index_cast %329 : i32 to index
    %c0_131 = arith.constant 0 : index
    %331 = vector.load %arg15[%330, %c0_131] : memref<64x128xf32, #tpu.memory_space<vmem>>, vector<8x128xf32>
    %cst_132 = arith.constant dense<0.000000e+00> : vector<8x128xf32>
    %332 = tpu.matmul %320, %232, %cst_132 {dimension_numbers = #tpu.dot_dimension_numbers<[1], [0], [0], [1], [0, 0, 1, 1], [], []>} : vector<8x32xf32>, vector<32x128xf32>, vector<8x128xf32> -> vector<8x128xf32>
    %333 = arith.addf %331, %332 : vector<8x128xf32>
    %334 = arith.negf %333 : vector<8x128xf32>
    %335 = math.exp %334 : vector<8x128xf32>
    %cst_133 = arith.constant 1.000000e+00 : f32
    %336 = vector.broadcast %cst_133 : f32 to vector<8x128xf32>
    %337 = arith.addf %336, %335 : vector<8x128xf32>
    %338 = arith.divf %336, %337 : vector<8x128xf32>
    %339 = math.tanh %333 : vector<8x128xf32>
    %340 = vector.extract_strided_slice %338 {offsets = [0, 0], sizes = [8, 32], strides = [1, 1]} : vector<8x128xf32> to vector<8x32xf32>
    %341 = vector.extract_strided_slice %338 {offsets = [0, 32], sizes = [8, 32], strides = [1, 1]} : vector<8x128xf32> to vector<8x32xf32>
    %342 = vector.extract_strided_slice %339 {offsets = [0, 64], sizes = [8, 32], strides = [1, 1]} : vector<8x128xf32> to vector<8x32xf32>
    %343 = vector.extract_strided_slice %338 {offsets = [0, 96], sizes = [8, 32], strides = [1, 1]} : vector<8x128xf32> to vector<8x32xf32>
    %344 = arith.mulf %341, %318 : vector<8x32xf32>
    %345 = arith.mulf %340, %342 : vector<8x32xf32>
    %346 = arith.addf %344, %345 : vector<8x32xf32>
    %347 = math.tanh %346 : vector<8x32xf32>
    %348 = arith.mulf %343, %347 : vector<8x32xf32>
    %349 = arith.addi %4, %c3_i32_129 : i32
    %c1_i32_134 = arith.constant 1 : i32
    %350 = arith.addi %349, %c1_i32_134 : i32
    %351 = vector.broadcast %350 : i32 to vector<8x1xi32>
    %352 = arith.cmpi eq, %3, %351 : vector<8x1xi32>
    %353 = vector.shape_cast %352 : vector<8x1xi1> to vector<8x1xi1>
    %354 = vector.broadcast %353 : vector<8x1xi1> to vector<8x32xi1>
    %355 = arith.select %354, %348, %327 : vector<8x32xi1>, vector<8x32xf32>
    %c4_i32_135 = arith.constant 4 : i32
    %c8_i32_136 = arith.constant 8 : i32
    %356 = arith.muli %c4_i32_135, %c8_i32_136 : i32
    %357 = tpu.assume_multiple %356, 8 : i32
    %358 = arith.index_cast %357 : i32 to index
    %c0_137 = arith.constant 0 : index
    %359 = vector.load %arg15[%358, %c0_137] : memref<64x128xf32, #tpu.memory_space<vmem>>, vector<8x128xf32>
    %cst_138 = arith.constant dense<0.000000e+00> : vector<8x128xf32>
    %360 = tpu.matmul %348, %232, %cst_138 {dimension_numbers = #tpu.dot_dimension_numbers<[1], [0], [0], [1], [0, 0, 1, 1], [], []>} : vector<8x32xf32>, vector<32x128xf32>, vector<8x128xf32> -> vector<8x128xf32>
    %361 = arith.addf %359, %360 : vector<8x128xf32>
    %362 = arith.negf %361 : vector<8x128xf32>
    %363 = math.exp %362 : vector<8x128xf32>
    %cst_139 = arith.constant 1.000000e+00 : f32
    %364 = vector.broadcast %cst_139 : f32 to vector<8x128xf32>
    %365 = arith.addf %364, %363 : vector<8x128xf32>
    %366 = arith.divf %364, %365 : vector<8x128xf32>
    %367 = math.tanh %361 : vector<8x128xf32>
    %368 = vector.extract_strided_slice %366 {offsets = [0, 0], sizes = [8, 32], strides = [1, 1]} : vector<8x128xf32> to vector<8x32xf32>
    %369 = vector.extract_strided_slice %366 {offsets = [0, 32], sizes = [8, 32], strides = [1, 1]} : vector<8x128xf32> to vector<8x32xf32>
    %370 = vector.extract_strided_slice %367 {offsets = [0, 64], sizes = [8, 32], strides = [1, 1]} : vector<8x128xf32> to vector<8x32xf32>
    %371 = vector.extract_strided_slice %366 {offsets = [0, 96], sizes = [8, 32], strides = [1, 1]} : vector<8x128xf32> to vector<8x32xf32>
    %372 = arith.mulf %369, %346 : vector<8x32xf32>
    %373 = arith.mulf %368, %370 : vector<8x32xf32>
    %374 = arith.addf %372, %373 : vector<8x32xf32>
    %375 = math.tanh %374 : vector<8x32xf32>
    %376 = arith.mulf %371, %375 : vector<8x32xf32>
    %377 = arith.addi %4, %c4_i32_135 : i32
    %c1_i32_140 = arith.constant 1 : i32
    %378 = arith.addi %377, %c1_i32_140 : i32
    %379 = vector.broadcast %378 : i32 to vector<8x1xi32>
    %380 = arith.cmpi eq, %3, %379 : vector<8x1xi32>
    %381 = vector.shape_cast %380 : vector<8x1xi1> to vector<8x1xi1>
    %382 = vector.broadcast %381 : vector<8x1xi1> to vector<8x32xi1>
    %383 = arith.select %382, %376, %355 : vector<8x32xi1>, vector<8x32xf32>
    %c5_i32_141 = arith.constant 5 : i32
    %c8_i32_142 = arith.constant 8 : i32
    %384 = arith.muli %c5_i32_141, %c8_i32_142 : i32
    %385 = tpu.assume_multiple %384, 8 : i32
    %386 = arith.index_cast %385 : i32 to index
    %c0_143 = arith.constant 0 : index
    %387 = vector.load %arg15[%386, %c0_143] : memref<64x128xf32, #tpu.memory_space<vmem>>, vector<8x128xf32>
    %cst_144 = arith.constant dense<0.000000e+00> : vector<8x128xf32>
    %388 = tpu.matmul %376, %232, %cst_144 {dimension_numbers = #tpu.dot_dimension_numbers<[1], [0], [0], [1], [0, 0, 1, 1], [], []>} : vector<8x32xf32>, vector<32x128xf32>, vector<8x128xf32> -> vector<8x128xf32>
    %389 = arith.addf %387, %388 : vector<8x128xf32>
    %390 = arith.negf %389 : vector<8x128xf32>
    %391 = math.exp %390 : vector<8x128xf32>
    %cst_145 = arith.constant 1.000000e+00 : f32
    %392 = vector.broadcast %cst_145 : f32 to vector<8x128xf32>
    %393 = arith.addf %392, %391 : vector<8x128xf32>
    %394 = arith.divf %392, %393 : vector<8x128xf32>
    %395 = math.tanh %389 : vector<8x128xf32>
    %396 = vector.extract_strided_slice %394 {offsets = [0, 0], sizes = [8, 32], strides = [1, 1]} : vector<8x128xf32> to vector<8x32xf32>
    %397 = vector.extract_strided_slice %394 {offsets = [0, 32], sizes = [8, 32], strides = [1, 1]} : vector<8x128xf32> to vector<8x32xf32>
    %398 = vector.extract_strided_slice %395 {offsets = [0, 64], sizes = [8, 32], strides = [1, 1]} : vector<8x128xf32> to vector<8x32xf32>
    %399 = vector.extract_strided_slice %394 {offsets = [0, 96], sizes = [8, 32], strides = [1, 1]} : vector<8x128xf32> to vector<8x32xf32>
    %400 = arith.mulf %397, %374 : vector<8x32xf32>
    %401 = arith.mulf %396, %398 : vector<8x32xf32>
    %402 = arith.addf %400, %401 : vector<8x32xf32>
    %403 = math.tanh %402 : vector<8x32xf32>
    %404 = arith.mulf %399, %403 : vector<8x32xf32>
    %405 = arith.addi %4, %c5_i32_141 : i32
    %c1_i32_146 = arith.constant 1 : i32
    %406 = arith.addi %405, %c1_i32_146 : i32
    %407 = vector.broadcast %406 : i32 to vector<8x1xi32>
    %408 = arith.cmpi eq, %3, %407 : vector<8x1xi32>
    %409 = vector.shape_cast %408 : vector<8x1xi1> to vector<8x1xi1>
    %410 = vector.broadcast %409 : vector<8x1xi1> to vector<8x32xi1>
    %411 = arith.select %410, %404, %383 : vector<8x32xi1>, vector<8x32xf32>
    %c6_i32_147 = arith.constant 6 : i32
    %c8_i32_148 = arith.constant 8 : i32
    %412 = arith.muli %c6_i32_147, %c8_i32_148 : i32
    %413 = tpu.assume_multiple %412, 8 : i32
    %414 = arith.index_cast %413 : i32 to index
    %c0_149 = arith.constant 0 : index
    %415 = vector.load %arg15[%414, %c0_149] : memref<64x128xf32, #tpu.memory_space<vmem>>, vector<8x128xf32>
    %cst_150 = arith.constant dense<0.000000e+00> : vector<8x128xf32>
    %416 = tpu.matmul %404, %232, %cst_150 {dimension_numbers = #tpu.dot_dimension_numbers<[1], [0], [0], [1], [0, 0, 1, 1], [], []>} : vector<8x32xf32>, vector<32x128xf32>, vector<8x128xf32> -> vector<8x128xf32>
    %417 = arith.addf %415, %416 : vector<8x128xf32>
    %418 = arith.negf %417 : vector<8x128xf32>
    %419 = math.exp %418 : vector<8x128xf32>
    %cst_151 = arith.constant 1.000000e+00 : f32
    %420 = vector.broadcast %cst_151 : f32 to vector<8x128xf32>
    %421 = arith.addf %420, %419 : vector<8x128xf32>
    %422 = arith.divf %420, %421 : vector<8x128xf32>
    %423 = math.tanh %417 : vector<8x128xf32>
    %424 = vector.extract_strided_slice %422 {offsets = [0, 0], sizes = [8, 32], strides = [1, 1]} : vector<8x128xf32> to vector<8x32xf32>
    %425 = vector.extract_strided_slice %422 {offsets = [0, 32], sizes = [8, 32], strides = [1, 1]} : vector<8x128xf32> to vector<8x32xf32>
    %426 = vector.extract_strided_slice %423 {offsets = [0, 64], sizes = [8, 32], strides = [1, 1]} : vector<8x128xf32> to vector<8x32xf32>
    %427 = vector.extract_strided_slice %422 {offsets = [0, 96], sizes = [8, 32], strides = [1, 1]} : vector<8x128xf32> to vector<8x32xf32>
    %428 = arith.mulf %425, %402 : vector<8x32xf32>
    %429 = arith.mulf %424, %426 : vector<8x32xf32>
    %430 = arith.addf %428, %429 : vector<8x32xf32>
    %431 = math.tanh %430 : vector<8x32xf32>
    %432 = arith.mulf %427, %431 : vector<8x32xf32>
    %433 = arith.addi %4, %c6_i32_147 : i32
    %c1_i32_152 = arith.constant 1 : i32
    %434 = arith.addi %433, %c1_i32_152 : i32
    %435 = vector.broadcast %434 : i32 to vector<8x1xi32>
    %436 = arith.cmpi eq, %3, %435 : vector<8x1xi32>
    %437 = vector.shape_cast %436 : vector<8x1xi1> to vector<8x1xi1>
    %438 = vector.broadcast %437 : vector<8x1xi1> to vector<8x32xi1>
    %439 = arith.select %438, %432, %411 : vector<8x32xi1>, vector<8x32xf32>
    %c7_i32_153 = arith.constant 7 : i32
    %c8_i32_154 = arith.constant 8 : i32
    %440 = arith.muli %c7_i32_153, %c8_i32_154 : i32
    %441 = tpu.assume_multiple %440, 8 : i32
    %442 = arith.index_cast %441 : i32 to index
    %c0_155 = arith.constant 0 : index
    %443 = vector.load %arg15[%442, %c0_155] : memref<64x128xf32, #tpu.memory_space<vmem>>, vector<8x128xf32>
    %cst_156 = arith.constant dense<0.000000e+00> : vector<8x128xf32>
    %444 = tpu.matmul %432, %232, %cst_156 {dimension_numbers = #tpu.dot_dimension_numbers<[1], [0], [0], [1], [0, 0, 1, 1], [], []>} : vector<8x32xf32>, vector<32x128xf32>, vector<8x128xf32> -> vector<8x128xf32>
    %445 = arith.addf %443, %444 : vector<8x128xf32>
    %446 = arith.negf %445 : vector<8x128xf32>
    %447 = math.exp %446 : vector<8x128xf32>
    %cst_157 = arith.constant 1.000000e+00 : f32
    %448 = vector.broadcast %cst_157 : f32 to vector<8x128xf32>
    %449 = arith.addf %448, %447 : vector<8x128xf32>
    %450 = arith.divf %448, %449 : vector<8x128xf32>
    %451 = math.tanh %445 : vector<8x128xf32>
    %452 = vector.extract_strided_slice %450 {offsets = [0, 0], sizes = [8, 32], strides = [1, 1]} : vector<8x128xf32> to vector<8x32xf32>
    %453 = vector.extract_strided_slice %450 {offsets = [0, 32], sizes = [8, 32], strides = [1, 1]} : vector<8x128xf32> to vector<8x32xf32>
    %454 = vector.extract_strided_slice %451 {offsets = [0, 64], sizes = [8, 32], strides = [1, 1]} : vector<8x128xf32> to vector<8x32xf32>
    %455 = vector.extract_strided_slice %450 {offsets = [0, 96], sizes = [8, 32], strides = [1, 1]} : vector<8x128xf32> to vector<8x32xf32>
    %456 = arith.mulf %453, %430 : vector<8x32xf32>
    %457 = arith.mulf %452, %454 : vector<8x32xf32>
    %458 = arith.addf %456, %457 : vector<8x32xf32>
    %459 = math.tanh %458 : vector<8x32xf32>
    %460 = arith.mulf %455, %459 : vector<8x32xf32>
    %461 = arith.addi %4, %c7_i32_153 : i32
    %c1_i32_158 = arith.constant 1 : i32
    %462 = arith.addi %461, %c1_i32_158 : i32
    %463 = vector.broadcast %462 : i32 to vector<8x1xi32>
    %464 = arith.cmpi eq, %3, %463 : vector<8x1xi32>
    %465 = vector.shape_cast %464 : vector<8x1xi1> to vector<8x1xi1>
    %466 = vector.broadcast %465 : vector<8x1xi1> to vector<8x32xi1>
    %467 = arith.select %466, %460, %439 : vector<8x32xi1>, vector<8x32xf32>
    %c8_i32_159 = arith.constant 8 : i32
    %c1_160 = arith.constant 1 : index
    %c0_161 = arith.constant 0 : index
    %c0_162 = arith.constant 0 : index
    %468 = vector.load %arg16[%c1_160, %c0_161, %c0_162] : memref<2x8x32xf32, #tpu.memory_space<vmem>>, vector<1x8x32xf32>
    %469 = vector.shape_cast %468 : vector<1x8x32xf32> to vector<8x32xf32>
    %470 = vector.shape_cast %460 : vector<8x32xf32> to vector<1x8x32xf32>
    tpu.vector_store %arg16[%c1_160, %c0_161, %c0_162], %470 {strides = array<i32>} : memref<2x8x32xf32, #tpu.memory_space<vmem>>, vector<1x8x32xf32>,
    %c1_163 = arith.constant 1 : index
    %c0_164 = arith.constant 0 : index
    %c0_165 = arith.constant 0 : index
    %471 = vector.load %arg17[%c1_163, %c0_164, %c0_165] : memref<2x8x32xf32, #tpu.memory_space<vmem>>, vector<1x8x32xf32>
    %472 = vector.shape_cast %471 : vector<1x8x32xf32> to vector<8x32xf32>
    %473 = vector.shape_cast %458 : vector<8x32xf32> to vector<1x8x32xf32>
    tpu.vector_store %arg17[%c1_163, %c0_164, %c0_165], %473 {strides = array<i32>} : memref<2x8x32xf32, #tpu.memory_space<vmem>>, vector<1x8x32xf32>,
    %c0_166 = arith.constant 0 : index
    %c0_167 = arith.constant 0 : index
    %474 = vector.load %arg18[%c0_166, %c0_167] : memref<8x32xf32, #tpu.memory_space<vmem>>, vector<8x32xf32>
    tpu.vector_store %arg18[%c0_166, %c0_167], %467 {strides = array<i32>} : memref<8x32xf32, #tpu.memory_space<vmem>>, vector<8x32xf32>,
    %c1_i32_168 = arith.constant 1 : i32
    %475 = arith.cmpi eq, %arg1, %c1_i32_168 : i32
    %476 = arith.extui %475 : i1 to i32
    %c0_i32_169 = arith.constant 0 : i32
    %477 = arith.cmpi ne, %476, %c0_i32_169 : i32
    scf.if %477 {
      %c0_170 = arith.constant 0 : index
      %c0_171 = arith.constant 0 : index
      %478 = vector.load %arg18[%c0_170, %c0_171] : memref<8x32xf32, #tpu.memory_space<vmem>>, vector<8x32xf32>
      %c0_172 = arith.constant 0 : index
      %c0_173 = arith.constant 0 : index
      %479 = vector.load %arg10[%c0_172, %c0_173] : memref<32x128xf32, #tpu.memory_space<vmem>>, vector<32x128xf32>
      %cst_174 = arith.constant dense<0.000000e+00> : vector<8x128xf32>
      %480 = tpu.matmul %478, %479, %cst_174 {dimension_numbers = #tpu.dot_dimension_numbers<[1], [0], [0], [1], [0, 0, 1, 1], [], []>} : vector<8x32xf32>, vector<32x128xf32>, vector<8x128xf32> -> vector<8x128xf32>
      %c0_175 = arith.constant 0 : index
      %c0_176 = arith.constant 0 : index
      %481 = vector.load %arg11[%c0_175, %c0_176] : memref<1x128xf32, #tpu.memory_space<vmem>>, vector<1x128xf32>
      %482 = vector.broadcast %481 : vector<1x128xf32> to vector<8x128xf32>
      %483 = arith.addf %480, %482 : vector<8x128xf32>
      %c0_177 = arith.constant 0 : index
      %c0_178 = arith.constant 0 : index
      %484 = vector.load %arg12[%c0_177, %c0_178] : memref<8x128xf32, #tpu.memory_space<vmem>>, vector<8x128xf32>
      tpu.vector_store %arg12[%c0_177, %c0_178], %483 {strides = array<i32>} : memref<8x128xf32, #tpu.memory_space<vmem>>, vector<8x128xf32>,
    } else {
    }
    return
  }
  func.func @transform_0(%arg0: i32, %arg1: i32) -> (i32, i32) {
    %c0_i32 = arith.constant 0 : i32
    %c0_i32_0 = arith.constant 0 : i32
    return %arg0, %c0_i32 : i32, i32
  }
  func.func @transform_1(%arg0: i32, %arg1: i32) -> (i32, i32, i32) {
    %c0_i32 = arith.constant 0 : i32
    %c0_i32_0 = arith.constant 0 : i32
    return %arg0, %arg1, %c0_i32 : i32, i32, i32
  }
  func.func @transform_2(%arg0: i32, %arg1: i32) -> (i32, i32) {
    %c0_i32 = arith.constant 0 : i32
    %c0_i32_0 = arith.constant 0 : i32
    %c0_i32_1 = arith.constant 0 : i32
    return %c0_i32, %c0_i32_0 : i32, i32
  }
  func.func @transform_3(%arg0: i32, %arg1: i32) -> (i32, i32) {
    %c0_i32 = arith.constant 0 : i32
    %c0_i32_0 = arith.constant 0 : i32
    %c0_i32_1 = arith.constant 0 : i32
    return %c0_i32, %c0_i32_0 : i32, i32
  }
  func.func @transform_4(%arg0: i32, %arg1: i32) -> (i32, i32) {
    %c0_i32 = arith.constant 0 : i32
    %c0_i32_0 = arith.constant 0 : i32
    %c0_i32_1 = arith.constant 0 : i32
    return %c0_i32, %c0_i32_0 : i32, i32
  }
  func.func @transform_5(%arg0: i32, %arg1: i32) -> (i32, i32) {
    %c0_i32 = arith.constant 0 : i32
    %c0_i32_0 = arith.constant 0 : i32
    %c0_i32_1 = arith.constant 0 : i32
    return %c0_i32, %c0_i32_0 : i32, i32
  }
  func.func @transform_6(%arg0: i32, %arg1: i32) -> (i32, i32) {
    %c0_i32 = arith.constant 0 : i32
    %c0_i32_0 = arith.constant 0 : i32
    %c0_i32_1 = arith.constant 0 : i32
    return %c0_i32, %c0_i32_0 : i32, i32
  }
  func.func @transform_7(%arg0: i32, %arg1: i32) -> (i32, i32) {
    %c0_i32 = arith.constant 0 : i32
    %c0_i32_0 = arith.constant 0 : i32
    %c0_i32_1 = arith.constant 0 : i32
    return %c0_i32, %c0_i32_0 : i32, i32
  }
  func.func @transform_8(%arg0: i32, %arg1: i32) -> (i32, i32) {
    %c0_i32 = arith.constant 0 : i32
    %c0_i32_0 = arith.constant 0 : i32
    %c0_i32_1 = arith.constant 0 : i32
    return %c0_i32, %c0_i32_0 : i32, i32
  }
  func.func @transform_9(%arg0: i32, %arg1: i32) -> (i32, i32) {
    %c0_i32 = arith.constant 0 : i32
    %c0_i32_0 = arith.constant 0 : i32
    %c0_i32_1 = arith.constant 0 : i32
    return %c0_i32, %c0_i32_0 : i32, i32
  }
  func.func @transform_10(%arg0: i32, %arg1: i32) -> (i32, i32) {
    %c0_i32 = arith.constant 0 : i32
    %c0_i32_0 = arith.constant 0 : i32
    return %arg0, %c0_i32 : i32, i32
  }
}

</mosaic_0001>

<bundles_post_ra>
// kernel: basic_lstm_forward.1
= control target key start
LH: loop header
LB: loop body
LE: loop exit
PB: predicated region body
PF: predicated region fallthrough
CT: control target
= control target key end

     0   :  { %s4444_s0 = inlined_call_operand.vmem [shape: s32[16,1], index: 0, kind: input, shape index: {}]   ;;  %s4445_s1 = inlined_call_operand.hbm [shape: f32[16,16,16], index: 1, kind: input, shape index: {}]   ;;  %s4446_s2 = inlined_call_operand.vmem [shape: f32[16,128], index: 2, kind: input, shape index: {}]   ;;  %s4447_s3 = inlined_call_operand.vmem [shape: f32[32,128], index: 3, kind: input, shape index: {}]   ;;  %s4448_s4 = inlined_call_operand.vmem [shape: f32[1,128], index: 4, kind: input, shape index: {}]   ;;  %s4449_s5 = inlined_call_operand.vmem [shape: f32[32,128], index: 5, kind: input, shape index: {}]   ;;  %s4450_s6 = inlined_call_operand.vmem [shape: f32[32,128], index: 6, kind: input, shape index: {}]   ;;  %s4451_s7 = inlined_call_operand.vmem [shape: f32[1,128], index: 7, kind: input, shape index: {}]   ;;  %s4452_s8 = inlined_call_operand.vmem [shape: f32[32,128], index: 8, kind: input, shape index: {}]   ;;  %s4453_s9 = inlined_call_operand.vmem [shape: f32[1,128], index: 9, kind: input, shape index: {}]   ;;  %s4454_s10 = inlined_call_operand.vmem [shape: f32[16,128], index: 10, kind: output, shape index: {}]  }
   0x1   :  { %4460 = sst [smem:[#allocation13_spill]] %s4449_s5 }
   0x2   :  { %4461 = sst [smem:[#allocation14_spill]] %s4450_s6 }
   0x3   :  { %4462 = sst [smem:[#allocation15_spill]] %s4451_s7 }
   0x4   :  { %4463 = sst [smem:[#allocation16_spill]] %s4452_s8 }
   0x5   :  { %4464 = sst [smem:[#allocation17_spill]] %s4453_s9 }
   0x6   :  { %15 = vsyncpa [#allocation9], 0 }
   0x7   :  { %17 = vsyncpa [#allocation9 + $0x1], 0  ;;  %s3721_s13 = smov 0   ;;  %s3723_s14 = smov 0  }
   0x8   :  { %s3725_s15 = smov 0   ;;  %s3727_s16 = smov 0  }
   0x9   :  { %s3729_s17 = smov 0   ;;  %s3731_s18 = smov 0  }
   0xa   :  { %s3733_s19 = smov 0   ;;  %s3735_s20 = smov 0  }
   0xb LB: > { %s2944_s21 = sadd.s32 4294967295, %s3651_s20   ;;  %s32_s22 = sadd.s32 1, %s3643_s18  ;;  %s3651_s20 = sphi %s3735_s20, %s23_s20   ;;  %s3647_s19 = sphi %s3733_s19, %s4484_s19   ;;  %s3643_s18 = sphi %s3731_s18, %s4483_s18   ;;  %s3639_s17 = sphi %s3729_s17, %s4482_s17   ;;  %s3635_s16 = sphi %s3727_s16, %s4481_s16   ;;  %s3631_s15 = sphi %s3725_s15, %s4480_s15   ;;  %s3627_s14 = sphi %s3723_s14, %s4479_s14   ;;  %s3623_s13 = sphi %s3721_s13, %s4478_s13  }
   0xc   : > { %p33_p0 = scmp.ge.s32.totalorder %s32_s22, 2  ;;  %s35_s23 = sadd.s32 1, %s3647_s19 }
   0xd   : > { %s70_s24 = sadd.s32 1, %s3631_s15  ;;  %p77_p1 = scmp.ne.s32.totalorder %s3631_s15, %s3627_s14 }
   0xe   : > { %s4486_s22 = smov (%p33_p0, %s32_s22), 0  ;;  %s4488_s23 = smov (!%p33_p0, %s35_s23), %s3647_s19 }
   0xf   : > { %4465 = sst [smem:[#allocation11_spill]] %s4486_s22  ;;  %s66_s25 = ssub.s32 %s3643_s18, %s4486_s22 }
  0x10   : > { %p78_p2 = scmp.eq.s32.totalorder %s3651_s20, 0  ;;  %p37_p3 = scmp.ge.s32.totalorder %s4488_s23, 2 }
  0x11   : > { %p83_p4 = scmp.ne.s32.totalorder %s3627_s14, %s3623_s13  ;;  %p84_p6 = scmp.eq.s32.totalorder %s2944_s21, 0 }
  0x12   : > { %p3772_p5 = por %p78_p2, %p77_p1  ;;  %s4490_s23 = smov (%p37_p3, %s4488_s23), 0 }
  0x13   : > { %4467 = sst [smem:[#allocation12_spill]] %s4490_s23  ;;  %p3778_p7 = por %p84_p6, %p83_p4 }
  0x14   : > { %s65_s28 = ssub.s32 %s3647_s19, %s4490_s23  ;;  %p3350_p8 = scmp.lt.s32.totalorder %s3651_s20, 4 }
  0x15   : > { %s67_s29 = sor.u32 %s66_s25, %s65_s28  ;;  %s332_s30 = sand.u32 1, %s3631_s15  }
  0x16   : > { %p68_p9 = scmp.eq.s32.totalorder %s67_s29, 0  ;;  %s2948_s11 = sshll.u32 %s332_s30, 6 }
  0x17   : > { %s3013_s12 = sshll.u32 %s3647_s19, 4  ;;  %s336_s9 = scalar_lea.vmem [#allocation8], %s2948_s11 }
  0x18   : > { %s3788_s13 = scalar_select %p68_p9, %s3631_s15, %s70_s24  }
  0x19   : > { %s342_s21 = sadd.s32 %s3643_s18, %s3013_s12  ;;  %s345_s8 = sshll.u32 %s336_s9, 4  ;;  %s346_s8 = int_to_ptr.vmem [resolvable:$true] %s345_s8 }
  0x1a   : > { %s2951_s22 = sshll.u32 %s342_s21, 7  ;;  %p3798_p10 = pnand %p3350_p8, %p3772_p5 }
  0x1b   : > { %s344_s5 = scalar_lea.hbm %s4445_s1, %s2951_s22  ;;  %p2952_p11 = scmp.ge.s32.totalorder %s3651_s20, 1 }
  0x1c   : > { %s333_s25 = scalar_lea.sflag [#allocation9], %s332_s30  ;;  %p3559_p12 = pneg %p3798_p10 }
  0x1d   : > { %s3570_s24 = scalar_lea.vmem %s346_s8, 1024  ;;  %s3653_s9 = smov [#allocation8]  }
  0x1e   : > { %p3571_p13 = scmp.ne.s32.totalorder %s346_s8, %s3570_s24  ;;  %s3575_s28 = sshll.u32 %s3653_s9, 4  ;;  %s3576_s28 = int_to_ptr.vmem [resolvable:$false] %s3575_s28 }
  0x1f   : > { %s3577_s6 = scalar_lea.vmem %s3576_s28, 2048  ;;  %p3578_p2 = scmp.lt.s32.totalorder %s346_s8, %s3576_s28 }
  0x20   : > { %p3573_p0 = pnand %p3571_p13, %p3559_p12  ;;  %p3579_p3 = scmp.lt.s32.totalorder %s3577_s6, %s3570_s24 }
  0x22   : > { %p3574_p1 = pneg %p3573_p0  ;;  %p3580_p4 = por %p3579_p3, %p3578_p2 }
  0x24   : > { %p3581_p5 = pnand %p3580_p4, %p3574_p1 }
  0x26   : > { %3584 = shalt.err (!%p3581_p5)
}
  0x27   : > { %s3654_s7 = smov 256   ;;  %s3655_s22 = smov 128  }
  0x28   : > { %s3656_s26 = smov 8   ;;  %p353_p6 = scmp.lt.s32.totalorder %s3651_s20, 5 }
  0x29   : > { %3349 = dma.hbm_to_vmem [thread:$0]  (!%p3798_p10), %s344_s5, 1024, %s346_s8, %s333_s25, %s3654_s7, %s3655_s22, %s3656_s26  }
  0x2a   : > { %p354_p8 = pnand %p2952_p11, %p353_p6 }
  0x2b   : > { %s359_s29 = sand.u32 (!%p354_p8), 1, %s3627_s14  }
  0x2c   : > { %357 = sbr.rel (%p354_p8) target bundleno = 10643 (0x2993), region = 60  ;;  %s2953_s30 = sshll.u32 (!%p354_p8), %s359_s29, 6 }
  0x2d   : > { %s360_s11 = scalar_lea.sflag (!%p354_p8), [#allocation9], %s359_s29  ;;  %s3811_s12 = scalar_lea.vmem (!%p354_p8), [#allocation8], %s2953_s30 }
  0x31   : > { %3618 = dma.done.wait (%p3778_p7), %s360_s11, 1024  }
  0x32   : > { %3620 = vsyncadd (%p3778_p7), %s360_s11, 4294966272  ;;  %p403_p9 = scmp.lt.s32.totalorder %s3639_s17, 1  ;;  %p2956_p10 = scmp.ne.s32.totalorder %s3635_s16, 0 }
  0x34   : > { %s4492_s17 = smov (!%p403_p9, %s3639_s17), 1  ;;  %415 = sbr.rel (%p2956_p10) target bundleno = 61 (0x3d), region = 68 }
  0x35   : > { %s2954_s5 = sshll.u32 %s4492_s17, 3 }
  0x36   : > { %s3822_s21 = scalar_lea.vmem %s4444_s0, %s2954_s5  ;;  %s3827_s9 = scalar_lea.vmem %s4454_s10, %s2954_s5 }
  0x39   : > { %vm416_vm0 = vcmask 261120   ;;  %v3657_v0 = vmov 0.0  }
  0x3a   : > { %417 = vst.msk [vmem:[#allocation5] sm:$0xff] %vm416_vm0, %v3657_v0  ;;  %418 = vst.msk [vmem:[#allocation5 + $0x8] sm:$0xff] %vm416_vm0, %v3657_v0 }
  0x3b   : > { %419 = vst.msk [vmem:[#allocation6] sm:$0xff] %vm416_vm0, %v3657_v0  ;;  %420 = vst.msk [vmem:[#allocation6 + $0x8] sm:$0xff] %vm416_vm0, %v3657_v0 }
  0x3c   : > { %421 = vst.msk [vmem:[#allocation7] sm:$0xff] %vm416_vm0, %v3657_v0 }
  0x3d PF: > { %v3833_v1 = vld [vmem:[%s4447_s3 + $0x18] sm:$0xff]  ;;  %v689_v2 = vld [vmem:[%s4446_s2 + $0x8] sm:$0xff]  ;;  %v3841_v3 = vld [vmem:[%s4447_s3 + $0x10] sm:$0xff]  ;;  %vm441_vm1 = vcmask 1041409   ;;  %vm444_vm2 = vcmask 1042434   ;;  %v3658_v4 = vmov 0.0  }
  0x3e   : > { %3137 = vmatprep.subr.mxu1 %v3658_v4  ;;  %3121 = vmatprep.subr.mxu0 %v689_v2  ;;  %v688_v5 = vld [vmem:[%s4446_s2] sm:$0xff]  ;;  %v424_v6 = vld [vmem:[%s3811_s12] sm:$0x1]  ;;  %v425_v7 = vld [vmem:[%s3811_s12 + $0x8] sm:$0x1]  ;;  %vm447_vm3 = vcmask 1043459  }
  0x3f   : > { %3138 = vmatpush3.msra.mxu1 %v3833_v1  ;;  %3122 = vmatpush3.msra.mxu0 %v689_v2  ;;  %v426_v8 = vld [vmem:[%s3811_s12 + $0x10] sm:$0x1]  ;;  %v427_v9 = vld [vmem:[%s3811_s12 + $0x18] sm:$0x1]  ;;  %v428_v10 = vld [vmem:[%s3811_s12 + $0x20] sm:$0x1] }
  0x40   : > { %3139 = vmatprep.subr.mxu1 %v3658_v4  ;;  %3123 = vmatprep.subr.mxu0 %v688_v5  ;;  %v429_v11 = vld [vmem:[%s3811_s12 + $0x28] sm:$0x1]  ;;  %v430_v12 = vld [vmem:[%s3811_s12 + $0x30] sm:$0x1]  ;;  %v431_v13 = vld [vmem:[%s3811_s12 + $0x38] sm:$0x1] }
  0x41   : > { %3140 = vmatpush3.msra.mxu1 %v3841_v3  ;;  %3124 = vmatpush3.msra.mxu0 %v688_v5  ;;  %v440_v14 = vrot.slane %v425_v7, 7  ;;  %v443_v15 = vrot.slane %v426_v8, 6  ;;  %v446_v16 = vrot.slane %v427_v9, 5  ;;  %v449_v17 = vrot.slane %v428_v10, 4  ;;  %v3861_v18 = vld [vmem:[%s4447_s3 + $0x8] sm:$0xff]  ;;  %v3867_v21 = vld [vmem:[%s4447_s3] sm:$0xff] }
  0x42   : > { %3141 = vmatprep.subr.mxu1 %v3658_v4  ;;  %vm450_vm4 = vcmask 1044484   ;;  %v452_v19 = vrot.slane %v429_v11, 3  ;;  %vm453_vm5 = vcmask 1045509   ;;  %v455_v20 = vrot.slane %v430_v12, 2  ;;  %3159 = vmatprep.subr.mxu0 %v3658_v4  ;;  %v464_v24 = vld [vmem:[%s3811_s12 + $0x1] sm:$0x1] }
  0x43   : > { %v442_v22 = vsel %vm441_vm1, %v440_v14, %v424_v6  ;;  %vm456_vm6 = vcmask 1046534   ;;  %v458_v23 = vrot.slane %v431_v13, 1  ;;  %3142 = vmatpush3.msra.mxu1 %v3861_v18  ;;  %v465_v25 = vld [vmem:[%s3811_s12 + $0x9] sm:$0x1]  ;;  %vm459_vm7 = vcmask 1047559   ;;  %v846_v42 = vld [vmem:[#allocation5] sm:$0xff] }
  0x44   : > { %v445_v26 = vsel %vm444_vm2, %v443_v15, %v442_v22  ;;  %v466_v27 = vld [vmem:[%s3811_s12 + $0x11] sm:$0x1]  ;;  %v467_v28 = vld [vmem:[%s3811_s12 + $0x19] sm:$0x1]  ;;  %v480_v29 = vrot.slane %v465_v25, 7  ;;  %3143 = vmatprep.subr.mxu1 %v3658_v4  ;;  %vm462_vm8 = vcmask 130048  }
  0x45   : > { %v448_v30 = vsel %vm447_vm3, %v446_v16, %v445_v26  ;;  %v468_v31 = vld [vmem:[%s3811_s12 + $0x21] sm:$0x1]  ;;  %v469_v32 = vld [vmem:[%s3811_s12 + $0x29] sm:$0x1]  ;;  %v470_v33 = vld [vmem:[%s3811_s12 + $0x31] sm:$0x1]  ;;  %3144 = vmatpush3.msra.mxu1 %v3867_v21 }
  0x46   : > { %v451_v34 = vsel %vm450_vm4, %v449_v17, %v448_v30  ;;  %v471_v35 = vld [vmem:[%s3811_s12 + $0x39] sm:$0x1]  ;;  %v481_v36 = vsel %vm441_vm1, %v480_v29, %v464_v24  ;;  %v482_v37 = vrot.slane %v466_v27, 6  ;;  %v484_v38 = vrot.slane %v467_v28, 5  ;;  %3148 = vmatprep.subr.mxu1 %v3658_v4  ;;  %v3924_v58 = vld [vmem:[%s4448_s4] ss:$0 sm:$0xff] }
  0x47   : > { %v454_v39 = vsel %vm453_vm5, %v452_v19, %v451_v34  ;;  %v486_v40 = vrot.slane %v468_v31, 4  ;;  %v488_v41 = vrot.slane %v469_v32, 3  ;;  %v490_v45 = vrot.slane %v470_v33, 2  ;;  %s3660_s24 = smov 64   ;;  %v847_v63 = vld [vmem:[#allocation6] sm:$0xff]  ;;  %s3661_s17 = smov 32  }
  0x48   : > { %v457_v43 = vsel %vm456_vm6, %v455_v20, %v454_v39  ;;  %v483_v44 = vsel %vm444_vm2, %v482_v37, %v481_v36  ;;  %v492_v48 = vrot.slane %v471_v35, 1  ;;  %vm3659_vm9 = vmmov 0   ;;  %v496_v33 = vld [vmem:[%s3811_s12 + $0x2] sm:$0x1]  ;;  %v497_v34 = vld [vmem:[%s3811_s12 + $0xa] sm:$0x1] }
  0x49   : > { %v460_v46 = vsel %vm459_vm7, %v458_v23, %v457_v43  ;;  %v485_v47 = vsel %vm447_vm3, %v484_v38, %v483_v44  ;;  %3145 = vmatprep.mubr.msk.f32.mxu1 %vm3659_vm9, %v3658_v4  ;;  %vm849_vm10 = vcmask 261120   ;;  %v498_v35 = vld [vmem:[%s3811_s12 + $0x12] sm:$0x1]  ;;  %v499_v36 = vld [vmem:[%s3811_s12 + $0x1a] sm:$0x1]  ;;  %s4470_s28 = sld [smem:[#allocation13_spill]] }
  0x4a   : > { %463 = vst.msk [vmem:[#allocation2] sm:$0xff] %vm462_vm8, %v460_v46  ;;  %v487_v49 = vsel %vm450_vm4, %v486_v40, %v485_v47  ;;  %3146 = vmatmul.mubr.msk.f32.vlgmr.msra.gmra.mxu1 %vm849_vm10, %v846_v42  ;;  %v500_v37 = vld [vmem:[%s3811_s12 + $0x22] sm:$0x1]  ;;  %v501_v38 = vld [vmem:[%s3811_s12 + $0x2a] sm:$0x1]  ;;  %v514_v42 = vrot.slane %v498_v35, 6 }
  0x4b   : > { %v489_v50 = vsel %vm453_vm5, %v488_v41, %v487_v49  ;;  %3149 = vmatpush3.msra.mxu1 %v3833_v1  ;;  %3156 = vmatprep.mubr.msk.f32.mxu1 %vm3659_vm9, %v3658_v4  ;;  %v502_v39 = vld [vmem:[%s3811_s12 + $0x32] sm:$0x1]  ;;  %v503_v40 = vld [vmem:[%s3811_s12 + $0x3a] sm:$0x1]  ;;  %v512_v41 = vrot.slane %v497_v34, 7  ;;  %v516_v43 = vrot.slane %v499_v36, 5 }
  0x4c   : > { %v491_v51 = vsel %vm456_vm6, %v490_v45, %v489_v50  ;;  %3150 = vmatprep.subr.mxu1 %v3658_v4  ;;  %v518_v44 = vrot.slane %v500_v37, 4  ;;  %v520_v45 = vrot.slane %v501_v38, 3  ;;  %v528_v46 = vld [vmem:[%s3811_s12 + $0x3] sm:$0x1]  ;;  %v524_v49 = vrot.slane %v503_v40, 1  ;;  %s4471_s8 = sld [smem:[#allocation14_spill]] }
  0x4d   : > { %v493_v52 = vsel %vm459_vm7, %v492_v48, %v491_v51  ;;  %3151 = vmatpush3.msra.mxu1 %v3841_v3  ;;  %v513_v47 = vsel %vm441_vm1, %v512_v41, %v496_v33  ;;  %v522_v48 = vrot.slane %v502_v39, 2  ;;  %v529_v50 = vld [vmem:[%s3811_s12 + $0xb] sm:$0x1]  ;;  %v530_v51 = vld [vmem:[%s3811_s12 + $0x13] sm:$0x1]  ;;  %s4472_s29 = sld [smem:[#allocation15_spill]] }
  0x4e   : > { %495 = vst.msk [vmem:[#allocation2 + $0x8] sm:$0xff] %vm462_vm8, %v493_v52  ;;  %3152 = vmatprep.subr.mxu1 %v3658_v4  ;;  %v515_v52 = vsel %vm444_vm2, %v514_v42, %v513_v47  ;;  %v593_v37 = vld [vmem:[%s3811_s12 + $0xd] sm:$0x1]  ;;  %v594_v38 = vld [vmem:[%s3811_s12 + $0x15] sm:$0x1]  ;;  %s4373_s30 = sshll.u32 %s3635_s16, 3 }
  0x4f   : > { %3153 = vmatpush3.msra.mxu1 %v3861_v18  ;;  %v595_v41 = vld [vmem:[%s3811_s12 + $0x1d] sm:$0x1]  ;;  %v596_v42 = vld [vmem:[%s3811_s12 + $0x25] sm:$0x1]  ;;  %s2080_s11 = sadd.s32 2, %s4373_s30  ;;  %s2190_s5 = sadd.s32 3, %s4373_s30 }
  0x50   : > { %3154 = vmatprep.subr.mxu1 %v3658_v4  ;;  %v599_v47 = vld [vmem:[%s3811_s12 + $0x3d] sm:$0x1]  ;;  %s1966_s23 = sadd.s32 1, %s4373_s30  ;;  %s2410_s25 = sadd.s32 5, %s4373_s30 }
  0x51   : > { %v695_v53 = vld [vmem:[#allocation2] sm:$0xff]  ;;  %3155 = vmatpush3.msra.mxu1 %v3867_v21  ;;  %s2740_s27 = sadd.s32 8, %s4373_s30  ;;  %s2630_s6 = sadd.s32 7, %s4373_s30 }
  0x52   : > { %3125 = vmatprep.mubr.msk.f32.mxu0 %vm462_vm8, %v695_v53  ;;  %3170 = vmatprep.subr.mxu1 %v3658_v4  ;;  %v531_v53 = vld [vmem:[%s3811_s12 + $0x1b] sm:$0x1]  ;;  %s3663_s7 = smov 96   ;;  %p3008_p7 = scmp.ne.s32.totalorder %s3635_s16, 1 }
  0x53   : > { %s4473_s26 = sld [smem:[#allocation16_spill]] (!%p3008_p7) }
  0x55   : > { %v696_v54 = vld [vmem:[#allocation2 + $0x8] sm:$0xff] }
  0x56   : > { %3126 = vmatmul.mubr.msk.f32.vlgmr.msra.gmra.mxu0 %vm462_vm8, %v696_v54  ;;  %v532_v54 = vld [vmem:[%s3811_s12 + $0x23] sm:$0x1] }
  0x57   : > { %3160 = vmatpush3.msra.mxu0 %v3833_v1 }
  0x58   : > { %3161 = vmatprep.subr.mxu0 %v3658_v4 }
  0x59   : > { %3162 = vmatpush3.msra.mxu0 %v3841_v3 }
  0x5a   : > { %3163 = vmatprep.subr.mxu0 %v3658_v4 }
  0x5b   : > { %3164 = vmatpush3.msra.mxu0 %v3861_v18 }
  0x5c   : > { %3165 = vmatprep.subr.mxu0 %v3658_v4 }
  0x5d   : > { %3166 = vmatpush3.msra.mxu0 %v3867_v21 }
  0x5e   : > { %3181 = vmatprep.subr.mxu0 %v3658_v4 }
 0x10a   : > { %v919_v55 = vpop.f32.mrf.mxu1 }
 0x10c   : > { %v3147_v56 = vpop.f32.mrf.mxu1 }
 0x10d   : > { %v517_v56 = vsel %vm447_vm3, %v516_v43, %v515_v52  ;;  %v597_v43 = vld [vmem:[%s3811_s12 + $0x2d] sm:$0x1]  ;;  %v614_v52 = vrot.slane %v596_v42, 4 }
 0x116   : > { %v3127_v57 = vpop.f32.mrf.mxu0 }
 0x117   : > { %v805_v17 = vadd.f32 %v3127_v57, %v3924_v58  ;;  %v534_v57 = vld [vmem:[%s3811_s12 + $0x33] sm:$0x1] }
 0x118   : > { %v799_v59 = vpop.f32.mrf.mxu0 }
 0x119   : > { %v800_v60 = vadd.f32 %v3924_v58, %v799_v59  ;;  %v535_v59 = vld [vmem:[%s3811_s12 + $0x3b] sm:$0x1] }
 0x11b   : > { %v923_v61 = vadd.f32 %v919_v55, %v800_v60  ;;  %v533_v55 = vld [vmem:[%s3811_s12 + $0x2b] sm:$0x1]  ;;  %v544_v60 = vrot.slane %v529_v50, 7 }
 0x11d   : > { %3429 = vtanh.f32 %v923_v61  ;;  %v2968_v0 = vmul.f32 -1.442695, %v923_v61  ;;  %v546_v61 = vrot.slane %v530_v51, 6  ;;  %v612_v51 = vrot.slane %v595_v41, 5 }
 0x11f   : > { %3431 = vpow2.f32 %v2968_v0  ;;  %v550_v0 = vrot.slane %v532_v54, 4  ;;  %v624_v54 = vld [vmem:[%s3811_s12 + $0x6] sm:$0x1] }
 0x12a   : > { %v3430_v62 = vpop.eup %3429 }
 0x12b   : > { %937 = vrot.lane.b32.xlu0 %v3430_v62, %s3660_s24  ;;  %v519_v62 = vsel %vm450_vm4, %v518_v44, %v517_v56 }
 0x12c   : > { %v3432_v2 = vpop.eup %3431 }
 0x12d   : > { %v927_v5 = vadd.f32 1.0, %v3432_v2  ;;  %v552_v2 = vrot.slane %v533_v55, 3 }
 0x12f   : > { %932 = vrot.lane.b32.xlu0 %v847_v63, %s3661_s17  ;;  %3433 = vrcp.f32 %v927_v5  ;;  %v548_v63 = vrot.slane %v531_v53, 5  ;;  %v560_v5 = vld [vmem:[%s3811_s12 + $0x4] sm:$0x1]  ;;  %v616_v53 = vrot.slane %v597_v43, 3 }
 0x13c   : > { %v3434_v6 = vpop.eup %3433 }
 0x19d   : > { %v938_v7 = vpop.permute.xlu0 %937 }
 0x19e   : > { %v940_v8 = vmul.f32 %v3434_v6, %v938_v7  ;;  %v545_v7 = vsel %vm441_vm1, %v544_v60, %v528_v46  ;;  %v598_v46 = vld [vmem:[%s3811_s12 + $0x35] sm:$0x1]  ;;  %v625_v60 = vld [vmem:[%s3811_s12 + $0xe] sm:$0x1] }
 0x1a0   : > { %942 = vrot.lane.b32.xlu1 %v940_v8, %s3661_s17  ;;  %v554_v8 = vrot.slane %v534_v57, 2  ;;  %v618_v57 = vrot.slane %v598_v46, 2 }
 0x1a1   : > { %v933_v9 = vpop.permute.xlu0 %932 }
 0x1a2   : > { %v935_v10 = vmul.f32 %v3434_v6, %v933_v9  ;;  %v556_v9 = vrot.slane %v535_v59, 1  ;;  %v620_v59 = vrot.slane %v599_v47, 1 }
 0x212   : > { %v943_v11 = vpop.permute.xlu1 %942 }
 0x213   : > { %v945_v12 = vadd.f32 %v943_v11, %v935_v10  ;;  %v561_v10 = vld [vmem:[%s3811_s12 + $0xc] sm:$0x1]  ;;  %v562_v11 = vld [vmem:[%s3811_s12 + $0x14] sm:$0x1] }
 0x215   : > { %3435 = vtanh.f32 %v945_v12 }
 0x222   : > { %v3436_v13 = vpop.eup %3435 }
 0x223   : > { %948 = vrot.lane.b32.xlu1 %v3436_v13, %s3660_s24  ;;  %v547_v13 = vsel %vm444_vm2, %v546_v61, %v545_v7  ;;  %v626_v61 = vld [vmem:[%s3811_s12 + $0x16] sm:$0x1] }
 0x295   : > { %v949_v14 = vpop.permute.xlu1 %948 }
 0x296   : > { %v951_v15 = vmul.f32 %v3434_v6, %v949_v14  ;;  %v521_v6 = vsel %vm453_vm5, %v520_v45, %v519_v62  ;;  %v563_v14 = vld [vmem:[%s3811_s12 + $0x1c] sm:$0x1] }
 0x298   : > { %953 = vrot.lane.b32.xlu0 %v951_v15, %s3661_s17  ;;  %v564_v15 = vld [vmem:[%s3811_s12 + $0x24] sm:$0x1] }
 0x30a   : > { %v954_v16 = vpop.permute.xlu0 %953 }
 0x30b   : > { %956 = vst.msk [vmem:[#allocation3] sm:$0xff] %vm849_vm10, %v954_v16  ;;  %3157 = vmatmul.mubr.msk.f32.vlgmr.msra.gmra.mxu1 %vm849_vm10, %v954_v16  ;;  %v565_v16 = vld [vmem:[%s3811_s12 + $0x2c] sm:$0x1] }
 0x30c   : > { %3171 = vmatpush3.msra.mxu1 %v3833_v1  ;;  %3178 = vmatprep.mubr.msk.f32.mxu1 %vm3659_vm9, %v3658_v4 }
 0x30d   : > { %3172 = vmatprep.subr.mxu1 %v3658_v4 }
 0x30e   : > { %3173 = vmatpush3.msra.mxu1 %v3841_v3 }
 0x30f   : > { %3174 = vmatprep.subr.mxu1 %v3658_v4 }
 0x310   : > { %3175 = vmatpush3.msra.mxu1 %v3861_v18 }
 0x311   : > { %3176 = vmatprep.subr.mxu1 %v3658_v4 }
 0x312   : > { %3177 = vmatpush3.msra.mxu1 %v3867_v21 }
 0x313   : > { %3192 = vmatprep.subr.mxu1 %v3658_v4 }
 0x3cb   : > { %v1027_v19 = vpop.f32.mrf.mxu1 }
 0x3cc   : > { %v1031_v20 = vadd.f32 %v1027_v19, %v805_v17 }
 0x3cd   : > { %v3158_v22 = vpop.f32.mrf.mxu1 }
 0x3ce   : > { %3437 = vtanh.f32 %v1031_v20  ;;  %v2970_v24 = vmul.f32 -1.442695, %v1031_v20  ;;  %v549_v20 = vsel %vm447_vm3, %v548_v63, %v547_v13  ;;  %v566_v22 = vld [vmem:[%s3811_s12 + $0x34] sm:$0x1]  ;;  %v642_v13 = vrot.slane %v626_v61, 6 }
 0x3cf   : > { %v586_v35 = vrot.slane %v566_v22, 2 }
 0x3d0   : > { %3439 = vpow2.f32 %v2970_v24  ;;  %v576_v24 = vrot.slane %v561_v10, 7  ;;  %v631_v10 = vld [vmem:[%s3811_s12 + $0x3e] sm:$0x1] }
 0x3d2   : > { %v577_v34 = vsel %vm441_vm1, %v576_v24, %v560_v5  ;;  %v629_v5 = vld [vmem:[%s3811_s12 + $0x2e] sm:$0x1]  ;;  %v658_v24 = vld [vmem:[%s3811_s12 + $0x17] sm:$0x1] }
 0x3db   : > { %v3438_v23 = vpop.eup %3437 }
 0x3dc   : > { %1041 = vrot.lane.b32.xlu1 %v3438_v23, %s3660_s24  ;;  %v567_v23 = vld [vmem:[%s3811_s12 + $0x3c] sm:$0x1] }
 0x3dd   : > { %v3440_v25 = vpop.eup %3439  ;;  %v588_v36 = vrot.slane %v567_v23, 1  ;;  %v657_v23 = vld [vmem:[%s3811_s12 + $0xf] sm:$0x1] }
 0x3de   : > { %v1035_v26 = vadd.f32 1.0, %v3440_v25  ;;  %v578_v25 = vrot.slane %v562_v11, 6  ;;  %v640_v11 = vrot.slane %v625_v60, 7 }
 0x3e0   : > { %3441 = vrcp.f32 %v1035_v26  ;;  %v551_v26 = vsel %vm450_vm4, %v550_v0, %v549_v20  ;;  %v579_v40 = vsel %vm444_vm2, %v578_v25, %v577_v34  ;;  %v627_v0 = vld [vmem:[%s3811_s12 + $0x1e] sm:$0x1]  ;;  %v648_v20 = vrot.slane %v629_v5, 3 }
 0x3e1   : > { %v553_v33 = vsel %vm453_vm5, %v552_v2, %v551_v26  ;;  %v628_v2 = vld [vmem:[%s3811_s12 + $0x26] sm:$0x1] }
 0x3e2   : > { %v555_v39 = vsel %vm456_vm6, %v554_v8, %v553_v33 }
 0x3e3   : > { %v557_v44 = vsel %vm459_vm7, %v556_v9, %v555_v39  ;;  %v630_v9 = vld [vmem:[%s3811_s12 + $0x36] sm:$0x1] }
 0x3e4   : > { %559 = vst.msk [vmem:[#allocation2 + $0x18] sm:$0xff] %vm462_vm8, %v557_v44  ;;  %v650_v22 = vrot.slane %v630_v9, 2 }
 0x3eb   : > { %v698_v33 = vld [vmem:[#allocation2 + $0x18] sm:$0xff] }
 0x3ed   : > { %v3946_v27 = vpop.eup %3441 }
 0x3ee   : > { %v1039_v30 = vmul.f32 %v3946_v27, %v945_v12  ;;  %v523_v12 = vsel %vm456_vm6, %v522_v48, %v521_v6  ;;  %v608_v48 = vrot.slane %v593_v37, 7  ;;  %v662_v37 = vld [vmem:[%s3811_s12 + $0x37] sm:$0x1] }
 0x3ef   : > { %v525_v19 = vsel %vm459_vm7, %v524_v49, %v523_v12  ;;  %v610_v49 = vrot.slane %v594_v38, 6  ;;  %v674_v38 = vrot.slane %v658_v24, 6  ;;  %v682_v47 = vrot.slane %v662_v37, 2 }
 0x3f0   : > { %527 = vst.msk [vmem:[#allocation2 + $0x10] sm:$0xff] %vm462_vm8, %v525_v19  ;;  %v641_v19 = vsel %vm441_vm1, %v640_v11, %v624_v54 }
 0x3f1   : > { %v643_v26 = vsel %vm444_vm2, %v642_v13, %v641_v19 }
 0x3f7   : > { %v697_v6 = vld [vmem:[#allocation2 + $0x10] sm:$0xff] }
 0x3f8   : > { %3128 = vmatprep.mubr.msk.f32.mxu0 %vm462_vm8, %v697_v6 }
 0x3f9   : > { %3129 = vmatmul.mubr.msk.f32.gmra.mxu0 %vm462_vm8, %v698_v33 }
 0x44e   : > { %v1042_v28 = vpop.permute.xlu1 %1041 }
 0x44f   : > { %v1044_v29 = vmul.f32 %v3946_v27, %v1042_v28  ;;  %v580_v28 = vrot.slane %v563_v14, 5  ;;  %v644_v14 = vrot.slane %v627_v0, 5 }
 0x451   : > { %1046 = vrot.lane.b32.xlu0 %v1044_v29, %s3661_s17  ;;  %v582_v29 = vrot.slane %v564_v15, 4  ;;  %v581_v45 = vsel %vm447_vm3, %v580_v28, %v579_v40  ;;  %v646_v15 = vrot.slane %v628_v2, 4  ;;  %v652_v28 = vrot.slane %v631_v10, 1  ;;  %v663_v40 = vld [vmem:[%s3811_s12 + $0x3f] sm:$0x1] }
 0x453   : > { %v583_v50 = vsel %vm450_vm4, %v582_v29, %v581_v45  ;;  %v659_v29 = vld [vmem:[%s3811_s12 + $0x1f] sm:$0x1] }
 0x454   : > { %v676_v42 = vrot.slane %v659_v29, 5 }
 0x4c3   : > { %v1047_v31 = vpop.permute.xlu0 %1046 }
 0x4c4   : > { %v3951_v32 = vadd.f32 %v1047_v31, %v1039_v30  ;;  %v584_v30 = vrot.slane %v565_v16, 3  ;;  %v592_v31 = vld [vmem:[%s3811_s12 + $0x5] sm:$0x1]  ;;  %v656_v16 = vld [vmem:[%s3811_s12 + $0x7] sm:$0x1] }
 0x4c5   : > { %v609_v56 = vsel %vm441_vm1, %v608_v48, %v592_v31  ;;  %v672_v31 = vrot.slane %v657_v23, 7 }
 0x4c6   : > { %3443 = vtanh.f32 %v3951_v32  ;;  %v585_v55 = vsel %vm453_vm5, %v584_v30, %v583_v50  ;;  %v611_v63 = vsel %vm444_vm2, %v610_v49, %v609_v56  ;;  %v660_v30 = vld [vmem:[%s3811_s12 + $0x27] sm:$0x1]  ;;  %v684_v50 = vrot.slane %v663_v40, 1 }
 0x4c7   : > { %v587_v62 = vsel %vm456_vm6, %v586_v35, %v585_v55  ;;  %v613_v8 = vsel %vm447_vm3, %v612_v51, %v611_v63  ;;  %v645_v35 = vsel %vm447_vm3, %v644_v14, %v643_v26  ;;  %v673_v41 = vsel %vm441_vm1, %v672_v31, %v656_v16 }
 0x4c8   : > { %v589_v7 = vsel %vm459_vm7, %v588_v36, %v587_v62  ;;  %v615_v12 = vsel %vm450_vm4, %v614_v52, %v613_v8  ;;  %v661_v36 = vld [vmem:[%s3811_s12 + $0x2f] sm:$0x1]  ;;  %v647_v39 = vsel %vm450_vm4, %v646_v15, %v645_v35  ;;  %v678_v43 = vrot.slane %v660_v30, 4  ;;  %s2520_s12 = sadd.s32 6, %s4373_s30 }
 0x4c9   : > { %591 = vst.msk [vmem:[#allocation2 + $0x20] sm:$0xff] %vm462_vm8, %v589_v7  ;;  %v649_v44 = vsel %vm453_vm5, %v648_v20, %v647_v39  ;;  %v675_v45 = vsel %vm444_vm2, %v674_v38, %v673_v41  ;;  %v680_v46 = vrot.slane %v661_v36, 3 }
 0x4ca   : > { %v651_v48 = vsel %vm456_vm6, %v650_v22, %v649_v44  ;;  %v677_v49 = vsel %vm447_vm3, %v676_v42, %v675_v45 }
 0x4cb   : > { %v653_v52 = vsel %vm459_vm7, %v652_v28, %v651_v48 }
 0x4cc   : > { %655 = vst.msk [vmem:[#allocation2 + $0x30] sm:$0xff] %vm462_vm8, %v653_v52 }
 0x4d0   : > { %v699_v51 = vld [vmem:[#allocation2 + $0x20] sm:$0xff] }
 0x4d1   : > { %3131 = vmatprep.mubr.msk.f32.mxu0 %vm462_vm8, %v699_v51 }
 0x4d3   : > { %v3444_v17 = vpop.eup %3443 }
 0x4d4   : > { %1052 = vrot.lane.b32.xlu1 %v3444_v17, %s3660_s24  ;;  %v617_v17 = vsel %vm453_vm5, %v616_v53, %v615_v12  ;;  %v679_v53 = vsel %vm450_vm4, %v678_v43, %v677_v49 }
 0x4d5   : > { %v619_v25 = vsel %vm456_vm6, %v618_v57, %v617_v17  ;;  %v681_v54 = vsel %vm453_vm5, %v680_v46, %v679_v53 }
 0x4d6   : > { %v621_v34 = vsel %vm459_vm7, %v620_v59, %v619_v25  ;;  %v683_v55 = vsel %vm456_vm6, %v682_v47, %v681_v54  ;;  %v701_v59 = vld [vmem:[#allocation2 + $0x30] sm:$0xff] }
 0x4d7   : > { %623 = vst.msk [vmem:[#allocation2 + $0x28] sm:$0xff] %vm462_vm8, %v621_v34  ;;  %v685_v56 = vsel %vm459_vm7, %v684_v50, %v683_v55 }
 0x4d8   : > { %687 = vst.msk [vmem:[#allocation2 + $0x38] sm:$0xff] %vm462_vm8, %v685_v56 }
 0x4de   : > { %v700_v57 = vld [vmem:[#allocation2 + $0x28] sm:$0xff] }
 0x4df   : > { %3132 = vmatmul.mubr.msk.f32.gmra.mxu0 %vm462_vm8, %v700_v57  ;;  %v702_v60 = vld [vmem:[#allocation2 + $0x38] sm:$0xff] }
 0x4e0   : > { %3134 = vmatprep.mubr.msk.f32.mxu0 %vm462_vm8, %v701_v59 }
 0x4e3   : > { %3135 = vmatmul.mubr.msk.f32.gmra.mxu0 %vm462_vm8, %v702_v60 }
 0x4e4   : > { %3167 = vmatprep.mubr.msk.f32.mxu0 %vm3659_vm9, %v3658_v4 }
 0x546   : > { %v1053_v61 = vpop.permute.xlu1 %1052 }
 0x547   : > { %v1055_v62 = vmul.f32 %v3946_v27, %v1053_v61  ;;  %v3130_v27 = vpop.f32.mrf.mxu0 }
 0x549   : > { %1057 = vrot.lane.b32.xlu0 %v1055_v62, %s3661_s17  ;;  %v809_v0 = vpop.f32.mrf.mxu0 }
 0x54a   : > { %v810_v8 = vadd.f32 %v3924_v58, %v809_v0 }
 0x59f   : > { %v4073_v2 = vpop.f32.mrf.mxu0 }
 0x5a1   : > { %v4075_v5 = vpop.f32.mrf.mxu0 }
 0x5a2   : > { %v820_v47 = vadd.f32 %v3924_v58, %v4075_v5 }
 0x5a3   : > { %v4077_v6 = vpop.f32.mrf.mxu0 }
 0x5a5   : > { %v4079_v7 = vpop.f32.mrf.mxu0 }
 0x5bb   : > { %v1058_v63 = vpop.permute.xlu0 %1057 }
 0x5bc   : > { %1061 = vst.msk [vmem:[#allocation3 + $0x8] sm:$0xff] %vm849_vm10, %v1058_v63  ;;  %3168 = vmatmul.mubr.msk.f32.vlgmr.msra.gmra.mxu0 %vm849_vm10, %v1058_v63 }
 0x5bd   : > { %3182 = vmatpush3.msra.mxu0 %v3833_v1  ;;  %3189 = vmatprep.mubr.msk.f32.mxu0 %vm3659_vm9, %v3658_v4 }
 0x5be   : > { %3183 = vmatprep.subr.mxu0 %v3658_v4 }
 0x5bf   : > { %3184 = vmatpush3.msra.mxu0 %v3841_v3 }
 0x5c0   : > { %3185 = vmatprep.subr.mxu0 %v3658_v4 }
 0x5c1   : > { %3186 = vmatpush3.msra.mxu0 %v3861_v18 }
 0x5c2   : > { %3187 = vmatprep.subr.mxu0 %v3658_v4 }
 0x5c3   : > { %3188 = vmatpush3.msra.mxu0 %v3867_v21 }
 0x5c4   : > { %3203 = vmatprep.subr.mxu0 %v3658_v4 }
 0x67c   : > { %v1132_v9 = vpop.f32.mrf.mxu0 }
 0x67d   : > { %v1136_v10 = vadd.f32 %v1132_v9, %v810_v8 }
 0x67e   : > { %v3169_v11 = vpop.f32.mrf.mxu0 }
 0x67f   : > { %3445 = vtanh.f32 %v1136_v10  ;;  %v2972_v13 = vmul.f32 -1.442695, %v1136_v10 }
 0x681   : > { %3447 = vpow2.f32 %v2972_v13 }
 0x68c   : > { %v3446_v12 = vpop.eup %3445 }
 0x68d   : > { %1146 = vrot.lane.b32.xlu1 %v3446_v12, %s3660_s24 }
 0x68e   : > { %v3448_v14 = vpop.eup %3447 }
 0x68f   : > { %v1140_v15 = vadd.f32 1.0, %v3448_v14 }
 0x691   : > { %3449 = vrcp.f32 %v1140_v15 }
 0x69e   : > { %v3450_v16 = vpop.eup %3449 }
 0x69f   : > { %v1144_v20 = vmul.f32 %v3450_v16, %v3951_v32  ;;  %v815_v32 = vadd.f32 %v3130_v27, %v3924_v58 }
 0x6ff   : > { %v1147_v17 = vpop.permute.xlu1 %1146 }
 0x700   : > { %v1149_v19 = vmul.f32 %v3450_v16, %v1147_v17 }
 0x702   : > { %1151 = vrot.lane.b32.xlu0 %v1149_v19, %s3661_s17 }
 0x774   : > { %v1152_v22 = vpop.permute.xlu0 %1151 }
 0x775   : > { %v1154_v23 = vadd.f32 %v1152_v22, %v1144_v20 }
 0x777   : > { %3451 = vtanh.f32 %v1154_v23 }
 0x784   : > { %v3452_v24 = vpop.eup %3451 }
 0x785   : > { %1157 = vrot.lane.b32.xlu1 %v3452_v24, %s3660_s24  ;;  %v1707_v24 = vld [vmem:[#allocation3] sm:$0xff] }
 0x7f7   : > { %v1158_v25 = vpop.permute.xlu1 %1157 }
 0x7f8   : > { %v1160_v26 = vmul.f32 %v3450_v16, %v1158_v25  ;;  %v1701_v16 = vld [vmem:[%s4470_s28 + $0x18] sm:$0xff]  ;;  %v1699_v25 = vld [vmem:[%s4470_s28 + $0x8] sm:$0xff] }
 0x7fa   : > { %1162 = vrot.lane.b32.xlu0 %v1160_v26, %s3661_s17  ;;  %v1698_v26 = vld [vmem:[%s4470_s28] sm:$0xff] }
 0x86c   : > { %v1163_v28 = vpop.permute.xlu0 %1162 }
 0x86d   : > { %1166 = vst.msk [vmem:[#allocation3 + $0x10] sm:$0xff] %vm849_vm10, %v1163_v28  ;;  %3179 = vmatmul.mubr.msk.f32.vlgmr.msra.gmra.mxu1 %vm849_vm10, %v1163_v28  ;;  %v1708_v28 = vld [vmem:[#allocation3 + $0x8] sm:$0xff] }
 0x86e   : > { %3193 = vmatpush3.msra.mxu1 %v3833_v1  ;;  %3200 = vmatprep.mubr.msk.f32.mxu1 %vm3659_vm9, %v3658_v4 }
 0x86f   : > { %3194 = vmatprep.subr.mxu1 %v3658_v4 }
 0x870   : > { %3195 = vmatpush3.msra.mxu1 %v3841_v3 }
 0x871   : > { %3196 = vmatprep.subr.mxu1 %v3658_v4 }
 0x872   : > { %3197 = vmatpush3.msra.mxu1 %v3861_v18 }
 0x873   : > { %3198 = vmatprep.subr.mxu1 %v3658_v4 }
 0x874   : > { %3199 = vmatpush3.msra.mxu1 %v3867_v21 }
 0x875   : > { %3214 = vmatprep.subr.mxu1 %v3658_v4 }
 0x92d   : > { %v1237_v29 = vpop.f32.mrf.mxu1 }
 0x92e   : > { %v1241_v30 = vadd.f32 %v1237_v29, %v815_v32  ;;  %v1709_v32 = vld [vmem:[#allocation3 + $0x10] sm:$0xff] }
 0x92f   : > { %v3180_v31 = vpop.f32.mrf.mxu1 }
 0x930   : > { %3453 = vtanh.f32 %v1241_v30  ;;  %v2974_v34 = vmul.f32 -1.442695, %v1241_v30 }
 0x932   : > { %3455 = vpow2.f32 %v2974_v34 }
 0x93d   : > { %v3454_v33 = vpop.eup %3453 }
 0x93e   : > { %1251 = vrot.lane.b32.xlu1 %v3454_v33, %s3660_s24  ;;  %v830_v33 = vadd.f32 %v3924_v58, %v4079_v7 }
 0x93f   : > { %v3456_v35 = vpop.eup %3455 }
 0x940   : > { %v1245_v36 = vadd.f32 1.0, %v3456_v35 }
 0x942   : > { %3457 = vrcp.f32 %v1245_v36 }
 0x94f   : > { %v3458_v37 = vpop.eup %3457 }
 0x950   : > { %v1249_v40 = vmul.f32 %v3458_v37, %v1154_v23  ;;  %v1700_v23 = vld [vmem:[%s4470_s28 + $0x10] sm:$0xff] }
 0x9b0   : > { %v1252_v38 = vpop.permute.xlu1 %1251 }
 0x9b1   : > { %v1254_v39 = vmul.f32 %v3458_v37, %v1252_v38 }
 0x9b3   : > { %1256 = vrot.lane.b32.xlu0 %v1254_v39, %s3661_s17 }
 0xa25   : > { %v1257_v41 = vpop.permute.xlu0 %1256 }
 0xa26   : > { %v1259_v42 = vadd.f32 %v1257_v41, %v1249_v40 }
 0xa28   : > { %3459 = vtanh.f32 %v1259_v42 }
 0xa35   : > { %v3460_v43 = vpop.eup %3459 }
 0xa36   : > { %1262 = vrot.lane.b32.xlu1 %v3460_v43, %s3660_s24 }
 0xaa8   : > { %v1263_v44 = vpop.permute.xlu1 %1262 }
 0xaa9   : > { %v1265_v45 = vmul.f32 %v3458_v37, %v1263_v44 }
 0xaab   : > { %1267 = vrot.lane.b32.xlu0 %v1265_v45, %s3661_s17 }
 0xb1d   : > { %v1268_v46 = vpop.permute.xlu0 %1267 }
 0xb1e   : > { %1271 = vst.msk [vmem:[#allocation3 + $0x18] sm:$0xff] %vm849_vm10, %v1268_v46  ;;  %3190 = vmatmul.mubr.msk.f32.vlgmr.msra.gmra.mxu0 %vm849_vm10, %v1268_v46 }
 0xb1f   : > { %3204 = vmatpush3.msra.mxu0 %v3833_v1  ;;  %3211 = vmatprep.mubr.msk.f32.mxu0 %vm3659_vm9, %v3658_v4 }
 0xb20   : > { %3205 = vmatprep.subr.mxu0 %v3658_v4 }
 0xb21   : > { %3206 = vmatpush3.msra.mxu0 %v3841_v3 }
 0xb22   : > { %3207 = vmatprep.subr.mxu0 %v3658_v4 }
 0xb23   : > { %3208 = vmatpush3.msra.mxu0 %v3861_v18 }
 0xb24   : > { %3209 = vmatprep.subr.mxu0 %v3658_v4 }
 0xb25   : > { %3210 = vmatpush3.msra.mxu0 %v3867_v21  ;;  %v1710_v29 = vld [vmem:[#allocation3 + $0x18] sm:$0xff] }
 0xb26   : > { %3225 = vmatprep.subr.mxu0 %v1701_v16 }
 0xbde   : > { %v1342_v48 = vpop.f32.mrf.mxu0 }
 0xbdf   : > { %v1346_v49 = vadd.f32 %v1342_v48, %v820_v47  ;;  %v4171_v47 = vld [vmem:[%s4471_s8 + $0x18] sm:$0xff]  ;;  %v4177_v48 = vld [vmem:[%s4471_s8 + $0x10] sm:$0xff] }
 0xbe0   : > { %v3191_v50 = vpop.f32.mrf.mxu0 }
 0xbe1   : > { %3461 = vtanh.f32 %v1346_v49  ;;  %v2976_v52 = vmul.f32 -1.442695, %v1346_v49  ;;  %v4184_v49 = vld [vmem:[%s4471_s8 + $0x8] sm:$0xff]  ;;  %v4191_v50 = vld [vmem:[%s4471_s8] sm:$0xff] }
 0xbe3   : > { %3463 = vpow2.f32 %v2976_v52 }
 0xbee   : > { %v3462_v51 = vpop.eup %3461 }
 0xbef   : > { %1356 = vrot.lane.b32.xlu1 %v3462_v51, %s3660_s24 }
 0xbf0   : > { %v3464_v53 = vpop.eup %3463 }
 0xbf1   : > { %v1350_v54 = vadd.f32 1.0, %v3464_v53  ;;  %v1861_v53 = vld [vmem:[#allocation6 + $0x8] sm:$0xff] }
 0xbf3   : > { %3465 = vrcp.f32 %v1350_v54 }
 0xc00   : > { %v3466_v55 = vpop.eup %3465 }
 0xc01   : > { %v1354_v59 = vmul.f32 %v3466_v55, %v1259_v42 }
 0xc61   : > { %v1357_v56 = vpop.permute.xlu1 %1356 }
 0xc62   : > { %v1359_v57 = vmul.f32 %v3466_v55, %v1357_v56 }
 0xc64   : > { %1361 = vrot.lane.b32.xlu0 %v1359_v57, %s3661_s17  ;;  %v835_v57 = vadd.f32 %v4077_v6, %v3924_v58 }
 0xcd6   : > { %v1362_v60 = vpop.permute.xlu0 %1361 }
 0xcd7   : > { %v1364_v61 = vadd.f32 %v1362_v60, %v1354_v59 }
 0xcd9   : > { %3467 = vtanh.f32 %v1364_v61 }
 0xce6   : > { %v3468_v62 = vpop.eup %3467 }
 0xce7   : > { %1367 = vrot.lane.b32.xlu1 %v3468_v62, %s3660_s24 }
 0xd59   : > { %v1368_v63 = vpop.permute.xlu1 %1367 }
 0xd5a   : > { %v1370_v27 = vmul.f32 %v3466_v55, %v1368_v63  ;;  %v1859_v55 = vld [vmem:[#allocation5 + $0x8] sm:$0xff] }
 0xd5c   : > { %1372 = vrot.lane.b32.xlu0 %v1370_v27, %s3661_s17  ;;  %v4229_v27 = vld [vmem:[%s4472_s29] ss:$0 sm:$0xff] }
 0xdce   : > { %v1373_v0 = vpop.permute.xlu0 %1372 }
 0xdcf   : > { %1376 = vst.msk [vmem:[#allocation3 + $0x20] sm:$0xff] %vm849_vm10, %v1373_v0  ;;  %3201 = vmatmul.mubr.msk.f32.vlgmr.msra.gmra.mxu1 %vm849_vm10, %v1373_v0 }
 0xdd0   : > { %3215 = vmatpush3.msra.mxu1 %v3833_v1  ;;  %3222 = vmatprep.mubr.msk.f32.mxu1 %vm3659_vm9, %v3658_v4  ;;  %v825_v1 = vadd.f32 %v4073_v2, %v3924_v58 }
 0xdd1   : > { %3216 = vmatprep.subr.mxu1 %v3658_v4 }
 0xdd2   : > { %3217 = vmatpush3.msra.mxu1 %v3841_v3 }
 0xdd3   : > { %3218 = vmatprep.subr.mxu1 %v3658_v4 }
 0xdd4   : > { %3219 = vmatpush3.msra.mxu1 %v3861_v18 }
 0xdd5   : > { %3220 = vmatprep.subr.mxu1 %v3658_v4 }
 0xdd6   : > { %3221 = vmatpush3.msra.mxu1 %v3867_v21  ;;  %v1711_v30 = vld [vmem:[#allocation3 + $0x20] sm:$0xff] }
 0xdd7   : > { %3245 = vmatprep.subr.mxu1 %v3658_v4 }
 0xe8f   : > { %v1447_v5 = vpop.f32.mrf.mxu1 }
 0xe90   : > { %v1451_v8 = vadd.f32 %v1447_v5, %v825_v1 }
 0xe91   : > { %v3202_v9 = vpop.f32.mrf.mxu1 }
 0xe92   : > { %3469 = vtanh.f32 %v1451_v8  ;;  %v2978_v3 = vmul.f32 -1.442695, %v1451_v8 }
 0xe94   : > { %3471 = vpow2.f32 %v2978_v3 }
 0xe9f   : > { %v3470_v10 = vpop.eup %3469 }
 0xea0   : > { %1461 = vrot.lane.b32.xlu1 %v3470_v10, %s3660_s24 }
 0xea1   : > { %v3472_v11 = vpop.eup %3471 }
 0xea2   : > { %v1455_v18 = vadd.f32 1.0, %v3472_v11 }
 0xea4   : > { %3473 = vrcp.f32 %v1455_v18 }
 0xeb1   : > { %v3474_v12 = vpop.eup %3473 }
 0xeb2   : > { %v1459_v14 = vmul.f32 %v3474_v12, %v1364_v61 }
 0xf12   : > { %v1462_v13 = vpop.permute.xlu1 %1461 }
 0xf13   : > { %v1464_v21 = vmul.f32 %v3474_v12, %v1462_v13 }
 0xf15   : > { %1466 = vrot.lane.b32.xlu0 %v1464_v21, %s3661_s17 }
 0xf87   : > { %v1467_v15 = vpop.permute.xlu0 %1466 }
 0xf88   : > { %v1469_v2 = vadd.f32 %v1467_v15, %v1459_v14 }
 0xf8a   : > { %3475 = vtanh.f32 %v1469_v2 }
 0xf97   : > { %v3476_v17 = vpop.eup %3475 }
 0xf98   : > { %1472 = vrot.lane.b32.xlu1 %v3476_v17, %s3660_s24 }
0x100a   : > { %v1473_v19 = vpop.permute.xlu1 %1472 }
0x100b   : > { %v1475_v20 = vmul.f32 %v3474_v12, %v1473_v19 }
0x100d   : > { %1477 = vrot.lane.b32.xlu0 %v1475_v20, %s3661_s17 }
0x107f   : > { %v1478_v22 = vpop.permute.xlu0 %1477 }
0x1080   : > { %1481 = vst.msk [vmem:[#allocation3 + $0x28] sm:$0xff] %vm849_vm10, %v1478_v22  ;;  %3212 = vmatmul.mubr.msk.f32.vlgmr.msra.gmra.mxu0 %vm849_vm10, %v1478_v22 }
0x1081   : > { %3226 = vmatpush3.msra.mxu0 %v1701_v16  ;;  %3233 = vmatprep.mubr.msk.f32.mxu0 %vm849_vm10, %v1707_v24 }
0x1082   : > { %3227 = vmatprep.subr.mxu0 %v1700_v23 }
0x1083   : > { %3228 = vmatpush3.msra.mxu0 %v1700_v23 }
0x1084   : > { %3229 = vmatprep.subr.mxu0 %v1699_v25 }
0x1085   : > { %3230 = vmatpush3.msra.mxu0 %v1699_v25 }
0x1086   : > { %3231 = vmatprep.subr.mxu0 %v1698_v26 }
0x1087   : > { %3232 = vmatpush3.msra.mxu0 %v1698_v26  ;;  %v1712_v31 = vld [vmem:[#allocation3 + $0x28] sm:$0xff] }
0x1088   : > { %3234 = vmatmul.mubr.msk.f32.vlgmr.msra.gmra.mxu0 %vm849_vm10, %v1708_v28  ;;  %3267 = vmatprep.subr.mxu0 %v3658_v4 }
0x1089   : > { %3236 = vmatprep.mubr.msk.f32.mxu0 %vm849_vm10, %v1709_v32  ;;  %3268 = vmatpush3.msra.mxu0 %v4171_v47 }
0x108a   : > { %3269 = vmatprep.subr.mxu0 %v3658_v4 }
0x108b   : > { %3270 = vmatpush3.msra.mxu0 %v4177_v48 }
0x108c   : > { %3237 = vmatmul.mubr.msk.f32.gmra.mxu0 %vm849_vm10, %v1710_v29  ;;  %3271 = vmatprep.subr.mxu0 %v3658_v4 }
0x108d   : > { %3239 = vmatprep.mubr.msk.f32.mxu0 %vm849_vm10, %v1711_v30  ;;  %3272 = vmatpush3.msra.mxu0 %v4184_v49 }
0x108e   : > { %3273 = vmatprep.subr.mxu0 %v3658_v4 }
0x108f   : > { %3274 = vmatpush3.msra.mxu0 %v4191_v50 }
0x1090   : > { %3240 = vmatmul.mubr.msk.f32.gmra.mxu0 %vm849_vm10, %v1712_v31  ;;  %3289 = vmatprep.subr.mxu0 %v3658_v4 }
0x1140   : > { %v1552_v34 = vpop.f32.mrf.mxu0 }
0x1141   : > { %v1556_v35 = vadd.f32 %v1552_v34, %v830_v33 }
0x1142   : > { %v3213_v36 = vpop.f32.mrf.mxu0 }
0x1143   : > { %3477 = vtanh.f32 %v1556_v35  ;;  %v2980_v38 = vmul.f32 -1.442695, %v1556_v35 }
0x1145   : > { %3479 = vpow2.f32 %v2980_v38 }
0x1148   : > { %v4224_v59 = vpop.f32.mrf.mxu0 }
0x1149   : > { %v1817_v34 = vadd.f32 %v4224_v59, %v4229_v27 }
0x114a   : > { %v1811_v63 = vpop.f32.mrf.mxu0 }
0x114b   : > { %v1812_v0 = vadd.f32 %v4229_v27, %v1811_v63 }
0x1150   : > { %v3478_v37 = vpop.eup %3477 }
0x1151   : > { %1566 = vrot.lane.b32.xlu1 %v3478_v37, %s3660_s24 }
0x1152   : > { %v3480_v39 = vpop.eup %3479 }
0x1153   : > { %v1560_v40 = vadd.f32 1.0, %v3480_v39 }
0x1155   : > { %3481 = vrcp.f32 %v1560_v40 }
0x1162   : > { %v3482_v41 = vpop.eup %3481 }
0x1163   : > { %v1564_v44 = vmul.f32 %v3482_v41, %v1469_v2 }
0x11c3   : > { %v1567_v42 = vpop.permute.xlu1 %1566 }
0x11c4   : > { %v1569_v43 = vmul.f32 %v3482_v41, %v1567_v42 }
0x11c6   : > { %1571 = vrot.lane.b32.xlu0 %v1569_v43, %s3661_s17 }
0x1238   : > { %v1572_v45 = vpop.permute.xlu0 %1571 }
0x1239   : > { %v4164_v7 = vadd.f32 %v1572_v45, %v1564_v44 }
0x123b   : > { %3483 = vtanh.f32 %v4164_v7 }
0x1248   : > { %v3484_v46 = vpop.eup %3483 }
0x1249   : > { %1577 = vrot.lane.b32.xlu1 %v3484_v46, %s3660_s24 }
0x12bb   : > { %v1578_v51 = vpop.permute.xlu1 %1577 }
0x12bc   : > { %v1580_v52 = vmul.f32 %v3482_v41, %v1578_v51 }
0x12be   : > { %1582 = vrot.lane.b32.xlu0 %v1580_v52, %s3661_s17 }
0x12c2   : > { %1946 = vrot.lane.b32.xlu0 %v1861_v53, %s3661_s17 }
0x1330   : > { %v1583_v54 = vpop.permute.xlu0 %1582 }
0x1331   : > { %1586 = vst.msk [vmem:[#allocation3 + $0x30] sm:$0xff] %vm849_vm10, %v1583_v54  ;;  %3223 = vmatmul.mubr.msk.f32.vlgmr.msra.gmra.mxu1 %vm849_vm10, %v1583_v54 }
0x1332   : > { %3246 = vmatpush3.msra.mxu1 %v4171_v47  ;;  %3253 = vmatprep.mubr.msk.f32.mxu1 %vm3659_vm9, %v3658_v4 }
0x1333   : > { %3247 = vmatprep.subr.mxu1 %v3658_v4 }
0x1334   : > { %3248 = vmatpush3.msra.mxu1 %v4177_v48  ;;  %v1947_v12 = vpop.permute.xlu0 %1946 }
0x1335   : > { %3249 = vmatprep.subr.mxu1 %v3658_v4 }
0x1336   : > { %3250 = vmatpush3.msra.mxu1 %v4184_v49 }
0x1337   : > { %3251 = vmatprep.subr.mxu1 %v3658_v4 }
0x1338   : > { %3252 = vmatpush3.msra.mxu1 %v4191_v50  ;;  %v1713_v56 = vld [vmem:[#allocation3 + $0x30] sm:$0xff] }
0x1339   : > { %3254 = vmatmul.mubr.msk.f32.vlgmr.msra.gmra.mxu1 %vm849_vm10, %v1859_v55  ;;  %3242 = vmatprep.mubr.msk.f32.mxu0 %vm849_vm10, %v1713_v56 }
0x133a   : > { %3256 = vmatprep.subr.mxu1 %v3658_v4  ;;  %3264 = vmatprep.mubr.msk.f32.mxu1 %vm3659_vm9, %v3658_v4 }
0x133b   : > { %3257 = vmatpush3.msra.mxu1 %v4171_v47 }
0x133c   : > { %3258 = vmatprep.subr.mxu1 %v3658_v4 }
0x133d   : > { %3259 = vmatpush3.msra.mxu1 %v4177_v48 }
0x133e   : > { %3260 = vmatprep.subr.mxu1 %v3658_v4 }
0x133f   : > { %3261 = vmatpush3.msra.mxu1 %v4184_v49 }
0x1340   : > { %3262 = vmatprep.subr.mxu1 %v3658_v4 }
0x1341   : > { %3263 = vmatpush3.msra.mxu1 %v4191_v50 }
0x1342   : > { %3278 = vmatprep.subr.mxu1 %v3658_v4 }
0x13f1   : > { %v1657_v60 = vpop.f32.mrf.mxu1 }
0x13f2   : > { %v1661_v61 = vadd.f32 %v1657_v60, %v835_v57  ;;  %v3238_v57 = vpop.f32.mrf.mxu0 }
0x13f3   : > { %v3224_v62 = vpop.f32.mrf.mxu1 }
0x13f4   : > { %v2982_v16 = vmul.f32 -1.442695, %v1661_v61  ;;  %v1821_v59 = vpop.f32.mrf.mxu0 }
0x13f6   : > { %v4283_v60 = vpop.f32.mrf.mxu0 }
0x13f9   : > { %v1933_v1 = vpop.f32.mrf.mxu1 }
0x13fa   : > { %v1937_v5 = vadd.f32 %v1933_v1, %v1812_v0  ;;  %v1822_v0 = vadd.f32 %v4229_v27, %v1821_v59 }
0x13fb   : > { %v3255_v8 = vpop.f32.mrf.mxu1 }
0x13fc   : > { %3485 = vtanh.f32 %v1937_v5  ;;  %v2993_v58 = vmul.f32 -1.442695, %v1937_v5 }
0x13fe   : > { %3487 = vpow2.f32 %v2993_v58 }
0x1409   : > { %v3486_v9 = vpop.eup %3485 }
0x140a   : > { %1951 = vrot.lane.b32.xlu1 %v3486_v9, %s3660_s24 }
0x140b   : > { %v3488_v6 = vpop.eup %3487 }
0x140c   : > { %v1941_v10 = vadd.f32 1.0, %v3488_v6 }
0x140e   : > { %3489 = vrcp.f32 %v1941_v10 }
0x141b   : > { %v3490_v3 = vpop.eup %3489 }
0x141c   : > { %v1949_v13 = vmul.f32 %v3490_v3, %v1947_v12 }
0x147c   : > { %v1952_v11 = vpop.permute.xlu1 %1951 }
0x147d   : > { %v1954_v18 = vmul.f32 %v3490_v3, %v1952_v11 }
0x147f   : > { %1956 = vrot.lane.b32.xlu1 %v1954_v18, %s3661_s17 }
0x14f1   : > { %v1957_v21 = vpop.permute.xlu1 %1956 }
0x14f2   : > { %v1959_v14 = vadd.f32 %v1957_v21, %v1949_v13 }
0x14f4   : > { %3491 = vtanh.f32 %v1959_v14 }
0x14f5   : > { %3493 = vtanh.f32 %v1661_v61  ;;  %v4285_v61 = vpop.f32.mrf.mxu0 }
0x14f6   : > { %3495 = vpow2.f32 %v2982_v16 }
0x1501   : > { %v3492_v15 = vpop.eup %3491 }
0x1502   : > { %1962 = vrot.lane.b32.xlu0 %v3492_v15, %s3660_s24  ;;  %v3494_v2 = vpop.eup %3493 }
0x1503   : > { %v3496_v17 = vpop.eup %3495 }
0x1504   : > { %v1665_v19 = vadd.f32 1.0, %v3496_v17  ;;  %v1827_v17 = vadd.f32 %v3238_v57, %v4229_v27 }
0x1506   : > { %1671 = vrot.lane.b32.xlu0 %v3494_v2, %s3660_s24  ;;  %3497 = vrcp.f32 %v1665_v19 }
0x1513   : > { %v3498_v23 = vpop.eup %3497 }
0x1514   : > { %v1669_v28 = vmul.f32 %v3498_v23, %v4164_v7 }
0x1574   : > { %v1963_v20 = vpop.permute.xlu0 %1962 }
0x1575   : > { %v4236_v22 = vmul.f32 %v3490_v3, %v1963_v20 }
0x1577   : > { %1981 = vrot.lane.b32.xlu1 %v4236_v22, %s3661_s17 }
0x1578   : > { %v1672_v24 = vpop.permute.xlu0 %1671 }
0x1579   : > { %v1674_v25 = vmul.f32 %v3498_v23, %v1672_v24 }
0x157b   : > { %1676 = vrot.lane.b32.xlu0 %v1674_v25, %s3661_s17 }
0x15e9   : > { %v1982_v26 = vpop.permute.xlu1 %1981 }
0x15ea   : > { %3265 = vmatmul.mubr.msk.f32.vlgmr.msra.gmra.mxu1 %vm849_vm10, %v1982_v26 }
0x15eb   : > { %3279 = vmatpush3.msra.mxu1 %v4171_v47  ;;  %3286 = vmatprep.mubr.msk.f32.mxu1 %vm3659_vm9, %v3658_v4 }
0x15ec   : > { %3280 = vmatprep.subr.mxu1 %v3658_v4 }
0x15ed   : > { %v1677_v32 = vpop.permute.xlu0 %1676  ;;  %3281 = vmatpush3.msra.mxu1 %v4177_v48 }
0x15ee   : > { %v4248_v29 = vadd.f32 %v1677_v32, %v1669_v28  ;;  %3282 = vmatprep.subr.mxu1 %v3658_v4 }
0x15ef   : > { %3283 = vmatpush3.msra.mxu1 %v4184_v49 }
0x15f0   : > { %3499 = vtanh.f32 %v4248_v29  ;;  %3284 = vmatprep.subr.mxu1 %v3658_v4 }
0x15f1   : > { %3285 = vmatpush3.msra.mxu1 %v4191_v50 }
0x15f2   : > { %3300 = vmatprep.subr.mxu1 %v3658_v4 }
0x15fd   : > { %v3500_v30 = vpop.eup %3499 }
0x15fe   : > { %1682 = vrot.lane.b32.xlu0 %v3500_v30, %s3660_s24 }
0x1670   : > { %v1683_v31 = vpop.permute.xlu0 %1682 }
0x1671   : > { %v1685_v33 = vmul.f32 %v3498_v23, %v1683_v31 }
0x1673   : > { %1687 = vrot.lane.b32.xlu0 %v1685_v33, %s3661_s17 }
0x16aa   : > { %v2051_v35 = vpop.f32.mrf.mxu1 }
0x16ab   : > { %v2055_v36 = vadd.f32 %v2051_v35, %v1817_v34 }
0x16ac   : > { %v3266_v37 = vpop.f32.mrf.mxu1 }
0x16ad   : > { %3501 = vtanh.f32 %v2055_v36  ;;  %v2995_v41 = vmul.f32 -1.442695, %v2055_v36 }
0x16af   : > { %3503 = vpow2.f32 %v2995_v41 }
0x16ba   : > { %v3502_v38 = vpop.eup %3501 }
0x16bb   : > { %2065 = vrot.lane.b32.xlu1 %v3502_v38, %s3660_s24 }
0x16bc   : > { %v3504_v42 = vpop.eup %3503 }
0x16bd   : > { %v2059_v43 = vadd.f32 1.0, %v3504_v42 }
0x16bf   : > { %3505 = vrcp.f32 %v2059_v43 }
0x16cc   : > { %v3506_v44 = vpop.eup %3505 }
0x16cd   : > { %v2063_v46 = vmul.f32 %v3506_v44, %v1959_v14 }
0x16e5   : > { %v1688_v39 = vpop.permute.xlu0 %1687 }
0x16e6   : > { %1691 = vst.msk [vmem:[#allocation3 + $0x38] sm:$0xff] %vm849_vm10, %v1688_v39  ;;  %1692 = vst.msk [vmem:[#allocation5] sm:$0xff] %vm849_vm10, %v1688_v39 }
0x16ed   : > { %v1714_v40 = vld [vmem:[#allocation3 + $0x38] sm:$0xff] }
0x16ee   : > { %3243 = vmatmul.mubr.msk.f32.gmra.mxu0 %vm849_vm10, %v1714_v40  ;;  %v1832_v40 = vadd.f32 %v4229_v27, %v4285_v61 }
0x16ef   : > { %3275 = vmatprep.mubr.msk.f32.mxu0 %vm3659_vm9, %v3658_v4 }
0x172d   : > { %v2066_v45 = vpop.permute.xlu1 %2065 }
0x172e   : > { %v2068_v7 = vmul.f32 %v3506_v44, %v2066_v45 }
0x1730   : > { %2070 = vrot.lane.b32.xlu1 %v2068_v7, %s3661_s17 }
0x17a2   : > { %v2071_v51 = vpop.permute.xlu1 %2070 }
0x17a3   : > { %v2073_v52 = vadd.f32 %v2071_v51, %v2063_v46 }
0x17a5   : > { %3507 = vtanh.f32 %v2073_v52 }
0x17ae   : > { %v4287_v62 = vpop.f32.mrf.mxu0 }
0x17b0   : > { %v4289_v63 = vpop.f32.mrf.mxu0 }
0x17b2   : > { %v3508_v53 = vpop.eup %3507 }
0x17b3   : > { %2076 = vrot.lane.b32.xlu1 %v3508_v53, %s3660_s24 }
0x1825   : > { %v2077_v54 = vpop.permute.xlu1 %2076 }
0x1826   : > { %v4268_v55 = vmul.f32 %v3506_v44, %v2077_v54 }
0x1828   : > { %2091 = vrot.lane.b32.xlu1 %v4268_v55, %s3661_s17 }
0x189a   : > { %v2092_v56 = vpop.permute.xlu1 %2091 }
0x189b   : > { %3276 = vmatmul.mubr.msk.f32.vlgmr.msra.gmra.mxu0 %vm849_vm10, %v2092_v56 }
0x189c   : > { %3290 = vmatpush3.msra.mxu0 %v4171_v47  ;;  %3297 = vmatprep.mubr.msk.f32.mxu0 %vm3659_vm9, %v3658_v4 }
0x189d   : > { %3291 = vmatprep.subr.mxu0 %v3658_v4 }
0x189e   : > { %3292 = vmatpush3.msra.mxu0 %v4177_v48 }
0x189f   : > { %3293 = vmatprep.subr.mxu0 %v3658_v4 }
0x18a0   : > { %3294 = vmatpush3.msra.mxu0 %v4184_v49 }
0x18a1   : > { %3295 = vmatprep.subr.mxu0 %v3658_v4 }
0x18a2   : > { %3296 = vmatpush3.msra.mxu0 %v4191_v50 }
0x18a3   : > { %3311 = vmatprep.subr.mxu0 %v3658_v4 }
0x195b   : > { %v2161_v1 = vpop.f32.mrf.mxu0 }
0x195c   : > { %v2165_v5 = vadd.f32 %v2161_v1, %v1822_v0 }
0x195d   : > { %v3277_v8 = vpop.f32.mrf.mxu0 }
0x195e   : > { %3509 = vtanh.f32 %v2165_v5  ;;  %v2997_v58 = vmul.f32 -1.442695, %v2165_v5  ;;  %v1837_v5 = vadd.f32 %v4283_v60, %v4229_v27 }
0x1960   : > { %3511 = vpow2.f32 %v2997_v58 }
0x196b   : > { %v3510_v9 = vpop.eup %3509 }
0x196c   : > { %2175 = vrot.lane.b32.xlu0 %v3510_v9, %s3660_s24 }
0x196d   : > { %v3512_v6 = vpop.eup %3511 }
0x196e   : > { %v2169_v10 = vadd.f32 1.0, %v3512_v6 }
0x1970   : > { %3513 = vrcp.f32 %v2169_v10 }
0x197d   : > { %v3514_v3 = vpop.eup %3513 }
0x197e   : > { %v2173_v12 = vmul.f32 %v3514_v3, %v2073_v52 }
0x19de   : > { %v2176_v11 = vpop.permute.xlu0 %2175 }
0x19df   : > { %v2178_v18 = vmul.f32 %v3514_v3, %v2176_v11 }
0x19e1   : > { %2180 = vrot.lane.b32.xlu1 %v2178_v18, %s3661_s17 }
0x1a53   : > { %v2181_v13 = vpop.permute.xlu1 %2180 }
0x1a54   : > { %v2183_v21 = vadd.f32 %v2181_v13, %v2173_v12 }
0x1a56   : > { %3515 = vtanh.f32 %v2183_v21 }
0x1a63   : > { %v3516_v14 = vpop.eup %3515 }
0x1a64   : > { %2186 = vrot.lane.b32.xlu0 %v3516_v14, %s3660_s24  ;;  %v1842_v14 = vadd.f32 %v4229_v27, %v4289_v63 }
0x1ad6   : > { %v2187_v15 = vpop.permute.xlu0 %2186 }
0x1ad7   : > { %v4295_v2 = vmul.f32 %v3514_v3, %v2187_v15 }
0x1ad9   : > { %2201 = vrot.lane.b32.xlu1 %v4295_v2, %s3661_s17 }
0x1b4b   : > { %v2202_v16 = vpop.permute.xlu1 %2201 }
0x1b4c   : > { %3287 = vmatmul.mubr.msk.f32.vlgmr.msra.gmra.mxu1 %vm849_vm10, %v2202_v16 }
0x1b4d   : > { %3301 = vmatpush3.msra.mxu1 %v4171_v47  ;;  %3308 = vmatprep.mubr.msk.f32.mxu1 %vm3659_vm9, %v3658_v4 }
0x1b4e   : > { %3302 = vmatprep.subr.mxu1 %v3658_v4 }
0x1b4f   : > { %3303 = vmatpush3.msra.mxu1 %v4177_v48 }
0x1b50   : > { %3304 = vmatprep.subr.mxu1 %v3658_v4 }
0x1b51   : > { %3305 = vmatpush3.msra.mxu1 %v4184_v49 }
0x1b52   : > { %3306 = vmatprep.subr.mxu1 %v3658_v4 }
0x1b53   : > { %3307 = vmatpush3.msra.mxu1 %v4191_v50 }
0x1b54   : > { %3322 = vmatprep.subr.mxu1 %v3658_v4 }
0x1c0c   : > { %v2271_v19 = vpop.f32.mrf.mxu1 }
0x1c0d   : > { %v2275_v20 = vadd.f32 %v2271_v19, %v1827_v17 }
0x1c0e   : > { %v3288_v23 = vpop.f32.mrf.mxu1 }
0x1c0f   : > { %3517 = vtanh.f32 %v2275_v20  ;;  %v2999_v25 = vmul.f32 -1.442695, %v2275_v20 }
0x1c11   : > { %3519 = vpow2.f32 %v2999_v25 }
0x1c1c   : > { %v3518_v24 = vpop.eup %3517 }
0x1c1d   : > { %2285 = vrot.lane.b32.xlu0 %v3518_v24, %s3660_s24 }
0x1c1e   : > { %v3520_v26 = vpop.eup %3519 }
0x1c1f   : > { %v2279_v28 = vadd.f32 1.0, %v3520_v26 }
0x1c21   : > { %3521 = vrcp.f32 %v2279_v28 }
0x1c2e   : > { %v3522_v32 = vpop.eup %3521 }
0x1c2f   : > { %v2283_v33 = vmul.f32 %v3522_v32, %v2183_v21 }
0x1c8f   : > { %v2286_v30 = vpop.permute.xlu0 %2285 }
0x1c90   : > { %v2288_v31 = vmul.f32 %v3522_v32, %v2286_v30 }
0x1c92   : > { %2290 = vrot.lane.b32.xlu1 %v2288_v31, %s3661_s17 }
0x1d04   : > { %v2291_v34 = vpop.permute.xlu1 %2290 }
0x1d05   : > { %v2293_v35 = vadd.f32 %v2291_v34, %v2283_v33 }
0x1d07   : > { %3523 = vtanh.f32 %v2293_v35 }
0x1d14   : > { %v3524_v36 = vpop.eup %3523 }
0x1d15   : > { %2296 = vrot.lane.b32.xlu0 %v3524_v36, %s3660_s24  ;;  %v1847_v36 = vadd.f32 %v4287_v62, %v4229_v27  ;;  %v2191_v27 = vstv %s2190_s5  ;;  %v1967_v62 = vstv %s1966_s23 }
0x1d87   : > { %v2297_v37 = vpop.permute.xlu0 %2296 }
0x1d88   : > { %v4314_v38 = vmul.f32 %v3522_v32, %v2297_v37 }
0x1d8a   : > { %2311 = vrot.lane.b32.xlu1 %v4314_v38, %s3661_s17 }
0x1dfc   : > { %v2312_v39 = vpop.permute.xlu1 %2311 }
0x1dfd   : > { %3298 = vmatmul.mubr.msk.f32.vlgmr.msra.gmra.mxu0 %vm849_vm10, %v2312_v39 }
0x1dfe   : > { %3312 = vmatpush3.msra.mxu0 %v4171_v47  ;;  %3319 = vmatprep.mubr.msk.f32.mxu0 %vm3659_vm9, %v3658_v4 }
0x1dff   : > { %3313 = vmatprep.subr.mxu0 %v3658_v4 }
0x1e00   : > { %3314 = vmatpush3.msra.mxu0 %v4177_v48 }
0x1e01   : > { %3315 = vmatprep.subr.mxu0 %v3658_v4 }
0x1e02   : > { %3316 = vmatpush3.msra.mxu0 %v4184_v49 }
0x1e03   : > { %3317 = vmatprep.subr.mxu0 %v3658_v4 }
0x1e04   : > { %3318 = vmatpush3.msra.mxu0 %v4191_v50 }
0x1ebd   : > { %v2381_v41 = vpop.f32.mrf.mxu0 }
0x1ebe   : > { %v2385_v42 = vadd.f32 %v2381_v41, %v1832_v40  ;;  %v422_v41 = vld [vmem:[%s3822_s21] sm:$0xff]  ;;  %s2300_s21 = sadd.s32 4, %s4373_s30 }
0x1ebf   : > { %v3299_v43 = vpop.f32.mrf.mxu0  ;;  %vm2192_vm12 = vcmp.eq.s32.totalorder %v422_v41, %v2191_v27  ;;  %vm1968_vm13 = vcmp.eq.s32.totalorder %v422_v41, %v1967_v62 }
0x1ec0   : > { %3525 = vtanh.f32 %v2385_v42  ;;  %v3001_v45 = vmul.f32 -1.442695, %v2385_v42  ;;  %v3662_v42 = vmov 0   ;;  %v2081_v43 = vstv %s2080_s11 }
0x1ec1   : > { %3428 = vset.pattern.permute.xlu1 %v3662_v42  ;;  %3427 = vset.pattern.permute.xlu0 %v3662_v42  ;;  %vm2082_vm11 = vcmp.eq.s32.totalorder %v422_v41, %v2081_v43 }
0x1ec2   : > { %3527 = vpow2.f32 %v3001_v45  ;;  %v2193_v45 = vsel %vm2192_vm12, 1, %v3662_v42 }
0x1ecd   : > { %v3526_v44 = vpop.eup %3525 }
0x1ece   : > { %2395 = vrot.lane.b32.xlu0 %v3526_v44, %s3660_s24  ;;  %v2083_v44 = vsel %vm2082_vm11, 1, %v3662_v42 }
0x1ecf   : > { %v3528_v7 = vpop.eup %3527 }
0x1ed0   : > { %v2389_v46 = vadd.f32 1.0, %v3528_v7  ;;  %v2411_v7 = vstv %s2410_s25 }
0x1ed1   : > { %vm2412_vm14 = vcmp.eq.s32.totalorder %v422_v41, %v2411_v7 }
0x1ed2   : > { %3529 = vrcp.f32 %v2389_v46 }
0x1edf   : > { %v3530_v51 = vpop.eup %3529 }
0x1ee0   : > { %v2393_v54 = vmul.f32 %v3530_v51, %v2293_v35 }
0x1f40   : > { %v2396_v52 = vpop.permute.xlu0 %2395 }
0x1f41   : > { %v2398_v53 = vmul.f32 %v3530_v51, %v2396_v52  ;;  %v2413_v52 = vsel %vm2412_vm14, 1, %v3662_v42 }
0x1f43   : > { %2400 = vrot.lane.b32.xlu1 %v2398_v53, %s3661_s17  ;;  %v1969_v53 = vsel %vm1968_vm13, 1, %v3662_v42 }
0x1fb5   : > { %v2401_v56 = vpop.permute.xlu1 %2400 }
0x1fb6   : > { %v2403_v57 = vadd.f32 %v2401_v56, %v2393_v54  ;;  %v2521_v54 = vstv %s2520_s12 }
0x1fb7   : > { %vm2522_vm0 = vcmp.eq.s32.totalorder %v422_v41, %v2521_v54 }
0x1fb8   : > { %3531 = vtanh.f32 %v2403_v57 }
0x1fc5   : > { %v3532_v59 = vpop.eup %3531 }
0x1fc6   : > { %2406 = vrot.lane.b32.xlu0 %v3532_v59, %s3660_s24  ;;  %v2631_v59 = vstv %s2630_s6 }
0x1fc7   : > { %vm2632_vm2 = vcmp.eq.s32.totalorder %v422_v41, %v2631_v59 }
0x2038   : > { %v2407_v61 = vpop.permute.xlu0 %2406 }
0x2039   : > { %v4333_v0 = vmul.f32 %v3530_v51, %v2407_v61  ;;  %v2301_v51 = vstv %s2300_s21  ;;  %s4474_s21 = sld [smem:[#allocation17_spill]] (!%p3008_p7) }
0x203a   : > { %vm2302_vm15 = vcmp.eq.s32.totalorder %v422_v41, %v2301_v51 }
0x203b   : > { %2421 = vrot.lane.b32.xlu1 %v4333_v0, %s3661_s17  ;;  %v2303_v56 = vsel %vm2302_vm15, 1, %v3662_v42 }
0x20ad   : > { %v2422_v1 = vpop.permute.xlu1 %2421 }
0x20ae   : > { %3309 = vmatmul.mubr.msk.f32.vlgmr.msra.gmra.mxu1 %vm849_vm10, %v2422_v1  ;;  %v2523_v1 = vsel %vm2522_vm0, 1, %v3662_v42 }
0x20af   : > { %3323 = vmatpush3.msra.mxu1 %v4171_v47  ;;  %3330 = vmatprep.mubr.msk.f32.mxu1 %vm3659_vm9, %v3658_v4 }
0x20b0   : > { %3324 = vmatprep.subr.mxu1 %v3658_v4 }
0x20b1   : > { %3325 = vmatpush3.msra.mxu1 %v4177_v48 }
0x20b2   : > { %3326 = vmatprep.subr.mxu1 %v3658_v4 }
0x20b3   : > { %3327 = vmatpush3.msra.mxu1 %v4184_v49 }
0x20b4   : > { %3328 = vmatprep.subr.mxu1 %v3658_v4 }
0x20b5   : > { %3329 = vmatpush3.msra.mxu1 %v4191_v50 }
0x216e   : > { %v2491_v8 = vpop.f32.mrf.mxu1 }
0x216f   : > { %v2495_v47 = vadd.f32 %v2491_v8, %v1837_v5  ;;  %v2633_v5 = vsel %vm2632_vm2, 1, %v3662_v42 }
0x2170   : > { %v3310_v9 = vpop.f32.mrf.mxu1 }
0x2171   : > { %3533 = vtanh.f32 %v2495_v47  ;;  %v3003_v6 = vmul.f32 -1.442695, %v2495_v47 }
0x2173   : > { %3535 = vpow2.f32 %v3003_v6 }
0x217e   : > { %v3534_v58 = vpop.eup %3533 }
0x217f   : > { %2505 = vrot.lane.b32.xlu0 %v3534_v58, %s3660_s24 }
0x2180   : > { %v3536_v48 = vpop.eup %3535 }
0x2181   : > { %v2499_v10 = vadd.f32 1.0, %v3536_v48 }
0x2183   : > { %3537 = vrcp.f32 %v2499_v10  ;;  %v1862_v10 = vld [vmem:[#allocation7] sm:$0xff] }
0x2190   : > { %v3538_v49 = vpop.eup %3537 }
0x2191   : > { %v2503_v50 = vmul.f32 %v3538_v49, %v2403_v57  ;;  %v2741_v57 = vstv %s2740_s27 }
0x2192   : > { %vm2742_vm1 = vcmp.eq.s32.totalorder %v422_v41, %v2741_v57 }
0x2193   : > { %v2743_v61 = vsel %vm2742_vm1, 1, %v3662_v42 }
0x21f1   : > { %v2506_v3 = vpop.permute.xlu0 %2505 }
0x21f2   : > { %v2508_v4 = vmul.f32 %v3538_v49, %v2506_v3 }
0x21f4   : > { %2510 = vrot.lane.b32.xlu1 %v2508_v4, %s3661_s17 }
0x2266   : > { %v2511_v11 = vpop.permute.xlu1 %2510 }
0x2267   : > { %v2513_v60 = vadd.f32 %v2511_v11, %v2503_v50 }
0x2269   : > { %3539 = vtanh.f32 %v2513_v60 }
0x2276   : > { %v3540_v18 = vpop.eup %3539 }
0x2277   : > { %2516 = vrot.lane.b32.xlu0 %v3540_v18, %s3660_s24 }
0x22e9   : > { %v2517_v12 = vpop.permute.xlu0 %2516 }
0x22ea   : > { %v4352_v13 = vmul.f32 %v3538_v49, %v2517_v12 }
0x22ec   : > { %2531 = vrot.lane.b32.xlu1 %v4352_v13, %s3661_s17 }
0x235e   : > { %v2532_v21 = vpop.permute.xlu1 %2531 }
0x235f   : > { %3320 = vmatmul.mubr.msk.f32.vlgmr.msra.gmra.mxu0 %vm849_vm10, %v2532_v21 }
0x241f   : > { %v2601_v15 = vpop.f32.mrf.mxu0 }
0x2420   : > { %v2605_v16 = vadd.f32 %v2601_v15, %v1842_v14 }
0x2421   : > { %v3321_v17 = vpop.f32.mrf.mxu0 }
0x2422   : > { %3541 = vtanh.f32 %v2605_v16  ;;  %v3005_v20 = vmul.f32 -1.442695, %v2605_v16 }
0x2424   : > { %3543 = vpow2.f32 %v3005_v20 }
0x242f   : > { %v3542_v19 = vpop.eup %3541 }
0x2430   : > { %2615 = vrot.lane.b32.xlu0 %v3542_v19, %s3660_s24 }
0x2431   : > { %v3544_v23 = vpop.eup %3543 }
0x2432   : > { %v2609_v24 = vadd.f32 1.0, %v3544_v23 }
0x2434   : > { %3545 = vrcp.f32 %v2609_v24 }
0x2441   : > { %v3546_v25 = vpop.eup %3545 }
0x2442   : > { %v2613_v32 = vmul.f32 %v3546_v25, %v2513_v60 }
0x24a2   : > { %v2616_v26 = vpop.permute.xlu0 %2615 }
0x24a3   : > { %v2618_v28 = vmul.f32 %v3546_v25, %v2616_v26 }
0x24a5   : > { %2620 = vrot.lane.b32.xlu1 %v2618_v28, %s3661_s17 }
0x2517   : > { %v2621_v63 = vpop.permute.xlu1 %2620 }
0x2518   : > { %v4361_v30 = vadd.f32 %v2621_v63, %v2613_v32 }
0x251a   : > { %3547 = vtanh.f32 %v4361_v30 }
0x2527   : > { %v3548_v31 = vpop.eup %3547 }
0x2528   : > { %2626 = vrot.lane.b32.xlu0 %v3548_v31, %s3660_s24 }
0x259a   : > { %v2627_v33 = vpop.permute.xlu0 %2626 }
0x259b   : > { %v4365_v34 = vmul.f32 %v3546_v25, %v2627_v33 }
0x259d   : > { %2641 = vrot.lane.b32.xlu1 %v4365_v34, %s3661_s17 }
0x260f   : > { %v2642_v35 = vpop.permute.xlu1 %2641 }
0x2610   : > { %3331 = vmatmul.mubr.msk.f32.vlgmr.msra.gmra.mxu1 %vm849_vm10, %v2642_v35 }
0x26d0   : > { %v2711_v37 = vpop.f32.mrf.mxu1 }
0x26d1   : > { %v2715_v39 = vadd.f32 %v2711_v37, %v1847_v36 }
0x26d2   : > { %v3332_v40 = vpop.f32.mrf.mxu1 }
0x26d3   : > { %3549 = vtanh.f32 %v2715_v39  ;;  %v3007_v8 = vmul.f32 -1.442695, %v2715_v39 }
0x26d5   : > { %3551 = vpow2.f32 %v3007_v8 }
0x26e0   : > { %v3550_v46 = vpop.eup %3549 }
0x26e1   : > { %2725 = vrot.lane.b32.xlu0 %v3550_v46, %s3660_s24 }
0x26e2   : > { %v3552_v47 = vpop.eup %3551 }
0x26e3   : > { %v2719_v9 = vadd.f32 1.0, %v3552_v47 }
0x26e5   : > { %1971 = vperm.xlu0 %3427, %v1969_v53   ;;  %3553 = vrcp.f32 %v2719_v9 }
0x26e9   : > { %2305 = vperm.xlu0 %3427, %v2303_v56  }
0x26ed   : > { %2525 = vperm.xlu0 %3427, %v2523_v1  }
0x26f1   : > { %2635 = vperm.xlu0 %3427, %v2633_v5  }
0x26f2   : > { %v3554_v58 = vpop.eup %3553 }
0x26f3   : > { %v2723_v49 = vmul.f32 %v3554_v58, %v4361_v30 }
0x2753   : > { %v2726_v6 = vpop.permute.xlu0 %2725 }
0x2754   : > { %v2728_v48 = vmul.f32 %v3554_v58, %v2726_v6 }
0x2756   : > { %2730 = vrot.lane.b32.xlu1 %v2728_v48, %s3661_s17 }
0x275a   : > { %2085 = vperm.xlu1 %3428, %v2083_v44  }
0x275e   : > { %2195 = vperm.xlu1 %3428, %v2193_v45  }
0x2760   : > { %v1972_v18 = vpop.permute.xlu0 %1971 }
0x2761   : > { %vm1973_vm3 = vcmp.eq.s32.totalorder %v1972_v18, 1 }
0x2762   : > { %2415 = vperm.xlu1 %3428, %v2413_v52  }
0x2764   : > { %v2306_v21 = vpop.permute.xlu0 %2305 }
0x2765   : > { %vm2307_vm6 = vcmp.eq.s32.totalorder %v2306_v21, 1 }
0x2766   : > { %1975 = vrot.lane.b32.xlu1 %v1862_v10, %s3663_s7 }
0x2768   : > { %v2526_v25 = vpop.permute.xlu0 %2525 }
0x2769   : > { %vm2527_vm8 = vcmp.eq.s32.totalorder %v2526_v25, 1 }
0x276a   : > { %2745 = vperm.xlu1 %3428, %v2743_v61  }
0x276c   : > { %v2636_v26 = vpop.permute.xlu0 %2635 }
0x276d   : > { %vm2637_vm9 = vcmp.eq.s32.totalorder %v2636_v26, 1 }
0x276e   : > { %1694 = vrot.lane.b32.xlu1 %v4248_v29, %s3663_s7 }
0x27c8   : > { %v2731_v3 = vpop.permute.xlu1 %2730 }
0x27c9   : > { %v2733_v4 = vadd.f32 %v2731_v3, %v2723_v49 }
0x27cb   : > { %3555 = vtanh.f32 %v2733_v4  ;;  %2755 = vrot.lane.b32.xlu1 %v2733_v4, %s3663_s7 }
0x27d5   : > { %v2086_v50 = vpop.permute.xlu1 %2085 }
0x27d6   : > { %vm2087_vm4 = vcmp.eq.s32.totalorder %v2086_v50, 1 }
0x27d8   : > { %v3556_v11 = vpop.eup %3555 }
0x27d9   : > { %v2196_v60 = vpop.permute.xlu1 %2195  ;;  %2736 = vrot.lane.b32.xlu0 %v3556_v11, %s3660_s24 }
0x27da   : > { %vm2197_vm5 = vcmp.eq.s32.totalorder %v2196_v60, 1 }
0x27dd   : > { %v2416_v12 = vpop.permute.xlu1 %2415 }
0x27de   : > { %vm2417_vm7 = vcmp.eq.s32.totalorder %v2416_v12, 1 }
0x27e1   : > { %v1976_v14 = vpop.permute.xlu1 %1975 }
0x27e2   : > { %v1978_v29 = vsel %vm1973_vm3, %v4236_v22, %v1976_v14 }
0x27e3   : > { %v2088_v15 = vsel %vm2087_vm4, %v4268_v55, %v1978_v29 }
0x27e4   : > { %v2198_v16 = vsel %vm2197_vm5, %v4295_v2, %v2088_v15 }
0x27e5   : > { %v2308_v17 = vsel %vm2307_vm6, %v4314_v38, %v2198_v16  ;;  %v2746_v19 = vpop.permute.xlu1 %2745 }
0x27e6   : > { %v2418_v20 = vsel %vm2417_vm7, %v4333_v0, %v2308_v17  ;;  %vm2747_vm11 = vcmp.eq.s32.totalorder %v2746_v19, 1 }
0x27e7   : > { %v2528_v22 = vsel %vm2527_vm8, %v4352_v13, %v2418_v20 }
0x27e8   : > { %v2638_v2 = vsel %vm2637_vm9, %v4365_v34, %v2528_v22 }
0x27e9   : > { %v1695_v23 = vpop.permute.xlu1 %1694 }
0x27ea   : > { %1697 = vst.msk [vmem:[#allocation6] sm:$0xff] %vm849_vm10, %v1695_v23 }
0x283d   : > { %v2756_v24 = vpop.permute.xlu1 %2755 }
0x283e   : > { %2758 = vst.msk [vmem:[#allocation6 + $0x8] sm:$0xff] %vm849_vm10, %v2756_v24 }
0x284b   : > { %v2737_v55 = vpop.permute.xlu0 %2736 }
0x284c   : > { %v2739_v28 = vmul.f32 %v3554_v58, %v2737_v55 }
0x284e   : > { %2750 = vrot.lane.b32.xlu0 %v2739_v28, %s3661_s17  ;;  %v2748_v38 = vsel %vm2747_vm11, %v2739_v28, %v2638_v2 }
0x2852   : > { %2760 = vrot.lane.b32.xlu0 %v2748_v38, %s3661_s17 }
0x28c0   : > { %v2751_v0 = vpop.permute.xlu0 %2750 }
0x28c1   : > { %2753 = vst.msk [vmem:[#allocation5 + $0x8] sm:$0xff] %vm849_vm10, %v2751_v0  ;;  %2767 = sbr.rel (%p3008_p7) target bundleno = 10643 (0x2993), region = 72 }
0x28c4   : > { %v2761_v32 = vpop.permute.xlu0 %2760 }
0x28c5   : > { %2763 = vst.msk [vmem:[#allocation7] sm:$0xff] %vm849_vm10, %v2761_v32 }
0x28c6   : > { %v2772_v13 = vld [vmem:[%s4473_s26 + $0x18] sm:$0xff]  ;;  %v3664_v63 = vmov 0.0   ;;  %v2771_v30 = vld [vmem:[%s4473_s26 + $0x10] sm:$0xff]  ;;  %vm3665_vm12 = vmmov 0   ;;  %v2770_v31 = vld [vmem:[%s4473_s26 + $0x8] sm:$0xff] }
0x28c7   : > { %3333 = vmatprep.subr.mxu0 %v3664_v63  ;;  %3341 = vmatprep.mubr.msk.f32.mxu0 %vm3665_vm12, %v3664_v63  ;;  %v2769_v33 = vld [vmem:[%s4473_s26] sm:$0xff] }
0x28c8   : > { %3334 = vmatpush3.msra.mxu0 %v2772_v13  ;;  %v3009_v35 = vld [vmem:[%s4474_s21] ss:$0 sm:$0xff] }
0x28c9   : > { %3335 = vmatprep.subr.mxu0 %v3664_v63 }
0x28ca   : > { %3336 = vmatpush3.msra.mxu0 %v2771_v30 }
0x28cb   : > { %3337 = vmatprep.subr.mxu0 %v3664_v63 }
0x28cc   : > { %3338 = vmatpush3.msra.mxu0 %v2770_v31  ;;  %v2768_v34 = vld [vmem:[#allocation7] sm:$0xff] }
0x28cd   : > { %3339 = vmatprep.subr.mxu0 %v3664_v63 }
0x28ce   : > { %3340 = vmatpush3.msra.mxu0 %v2769_v33 }
0x28cf   : > { %3342 = vmatmul.mubr.msk.f32.vlgmr.msra.gmra.mxu0 %vm849_vm10, %v2768_v34 }
0x298f   : > { %v2849_v36 = vpop.f32.mrf.mxu0 }
0x2990   : > { %v2850_v37 = vadd.f32 %v3009_v35, %v2849_v36 }
0x2991   : > { %v3343_v39 = vpop.f32.mrf.mxu0 }
0x2992   : > { %2853 = vst [vmem:[%s3827_s9] sm:$0xff] %v2850_v37 }
0x2993 PF: > { %s23_s20 = sadd.s32 1, %s3651_s20   ;;  %s4475_s12 = smov %s3788_s13 }
0x2994   : > { %p20_p11 = scmp.ge.s32.totalorder %s23_s20, 6   ;;  %s4476_s27 = sld [smem:[#allocation11_spill]] }
0x2995   : > { %s4477_s6 = sld [smem:[#allocation12_spill]]  ;;  %s4478_s13 = smov %s3627_s14 }
0x2996   : > { %s4479_s14 = smov %s3631_s15  ;;  %s4480_s15 = smov %s4475_s12 }
0x2997   : > { %s4481_s16 = smov %s3643_s18  ;;  %s4482_s17 = smov %s3647_s19 }
0x2998   :  { %22 = sbr.rel (!%p20_p11) target bundleno = 11 (0xb), region = 127 }
0x299a   : > { %s4483_s18 = smov %s4476_s27 }
0x299b   : > { %s4484_s19 = smov %s4477_s6 }
0x299d   :  { %2873 = vsyncpa [#allocation9], 1 }
0x299e   :  { %2875 = vsyncpa [#allocation9 + $0x1], 1 }

</bundles_post_ra>
